<compile_context>
chip_gen: v7x
topology: tpu7x:2x2x1
jax: 0.10.0
libtpu: 0.0.40
codegen_flags: <defaults>
</compile_context>

<pallas_src>
import math
import jax
import jax.numpy as jnp
from jax.experimental import pallas as pl
from jax.experimental.pallas import tpu as pltpu

# ---- small, module-consistent sizes -----------------------------------------
N_FEATURES = 4
D_MODEL    = 32
N_HEADS    = 4
HEAD_DIM   = D_MODEL // N_HEADS
N_HIDDEN   = 32
N_LAYERS   = 2
SEQ        = 8
BATCH      = 2
LN_EPS     = 1e-5

_PER_LAYER_REFS = 12  # wqkv, bqkv, wo, bo, ln1w, ln1b, w1, b1, w2, b2, ln2w, ln2b


def _layernorm(x, w, b):
    mu = jnp.mean(x, axis=-1, keepdims=True)
    var = jnp.mean((x - mu) ** 2, axis=-1, keepdims=True)
    return (x - mu) * jax.lax.rsqrt(var + LN_EPS) * w + b


# ---- the single fused kernel --------------------------------------------------
def _fused_forward_kernel(*refs):
    # refs layout:
    #   x_flat (B*S, F), mask_hb (H*B, S, S), pe_flat (B*S, D), w_in (F, D), b_in (1, D),
    #   N_LAYERS x [wqkv (D,3D), bqkv (1,3D), wo (D,D), bo (1,D), ln1w, ln1b,
    #               w1 (D,Hid), b1 (1,Hid), w2 (Hid,D), b2 (1,D), ln2w, ln2b],
    #   w_out (D, F), b_out (1, F), o (B*S, F)
    x_ref, mask_ref, pe_ref, w_in_ref, b_in_ref = refs[:5]
    layer_refs = refs[5:5 + _PER_LAYER_REFS * N_LAYERS]
    w_out_ref, b_out_ref, o_ref = refs[5 + _PER_LAYER_REFS * N_LAYERS:]

    B, S, H, hd, D = BATCH, SEQ, N_HEADS, HEAD_DIM, D_MODEL
    scale = 1.0 / math.sqrt(hd)

    mask = mask_ref[...]                                   # (H*B, S, S) additive, n = h*B + b

    # Input projection * sqrt(d_model) + positional encoding (dropout p=0 -> no-op).
    # TODO(synk): dropout (p=0.0 in this config) is a no-op and is not implemented.
    h = (jnp.dot(x_ref[...], w_in_ref[...], preferred_element_type=jnp.float32)
         + b_in_ref[...]) * math.sqrt(D) + pe_ref[...]     # (B*S, D)

    # Statically unrolled layer loop (distinct weight refs per layer).
    for l in range(N_LAYERS):
        (wqkv_ref, bqkv_ref, wo_ref, bo_ref, ln1w_ref, ln1b_ref,
         w1_ref, b1_ref, w2_ref, b2_ref, ln2w_ref, ln2b_ref) = \
            layer_refs[l * _PER_LAYER_REFS:(l + 1) * _PER_LAYER_REFS]

        # Fused QKV projection: one (B*S, D) x (D, 3D) matmul.
        qkv = jnp.dot(h, wqkv_ref[...], preferred_element_type=jnp.float32) + bqkv_ref[...]
        q = qkv[:, 0 * D:1 * D].reshape(B, S, D)
        k = qkv[:, 1 * D:2 * D].reshape(B, S, D)
        v = qkv[:, 2 * D:3 * D].reshape(B, S, D)

        # Head-batched attention: (head, batch) merged on a single leading axis -> (H*B, S, hd).
        qh = jnp.concatenate([q[:, :, i * hd:(i + 1) * hd] for i in range(H)], axis=0)
        kh = jnp.concatenate([k[:, :, i * hd:(i + 1) * hd] for i in range(H)], axis=0)
        vh = jnp.concatenate([v[:, :, i * hd:(i + 1) * hd] for i in range(H)], axis=0)

        s = jnp.einsum("nqd,nkd->nqk", qh, kh,
                       preferred_element_type=jnp.float32) * scale + mask
        s = s - jnp.max(s, axis=-1, keepdims=True)
        p = jnp.exp(s)
        p = p / jnp.sum(p, axis=-1, keepdims=True)
        ctx = jnp.einsum("nqk,nkd->nqd", p, vh,
                         preferred_element_type=jnp.float32)          # (H*B, S, hd)

        # Merge heads back onto the lane axis, flatten to (B*S, D), output projection.
        attn = jnp.concatenate([ctx[i * B:(i + 1) * B] for i in range(H)], axis=-1)  # (B, S, D)
        attn = attn.reshape(B * S, D)
        attn = jnp.dot(attn, wo_ref[...], preferred_element_type=jnp.float32) + bo_ref[...]

        # Residual + LayerNorm 1 (post-norm).
        y = _layernorm(h + attn, ln1w_ref[...], ln1b_ref[...])

        # FFN (ReLU), flat 2-D matmuls.
        f = jnp.maximum(jnp.dot(y, w1_ref[...], preferred_element_type=jnp.float32)
                        + b1_ref[...], 0.0)
        f = jnp.dot(f, w2_ref[...], preferred_element_type=jnp.float32) + b2_ref[...]

        # Residual + LayerNorm 2.
        h = _layernorm(y + f, ln2w_ref[...], ln2b_ref[...])

    # Output projection, written as a flattened (B*S, n_features) slab.
    o_ref[...] = (jnp.dot(h, w_out_ref[...], preferred_element_type=jnp.float32)
                  + b_out_ref[...])


# ---- deterministic parameter construction ------------------------------------
def _positional_encoding_table(max_len, d_model):
    position = jnp.arange(max_len, dtype=jnp.float32)[:, None]
    div_term = jnp.exp(jnp.arange(0, d_model, 2, dtype=jnp.float32)
                       * (-math.log(10000.0) / d_model))
    pe = jnp.zeros((max_len, d_model), dtype=jnp.float32)
    pe = pe.at[:, 0::2].set(jnp.sin(position * div_term))
    pe = pe.at[:, 1::2].set(jnp.cos(position * div_term))
    return pe


def init_params(key):
    ks = iter(jax.random.split(key, 3 + 9 * N_LAYERS))

    def uni(shape, bound):
        return jax.random.uniform(next(ks), shape, jnp.float32, -bound, bound)

    params = {}
    # InputLinear: weight uniform(-0.1, 0.1) per init_weights(); stored transposed (F, D).
    params["w_in"] = uni((N_FEATURES, D_MODEL), 0.1)
    params["b_in"] = uni((1, D_MODEL), 1.0 / math.sqrt(N_FEATURES))
    params["pe"] = _positional_encoding_table(SEQ, D_MODEL)

    bd = 1.0 / math.sqrt(D_MODEL)
    bh = 1.0 / math.sqrt(N_HIDDEN)
    layers = []
    for _ in range(N_LAYERS):
        wq = uni((D_MODEL, D_MODEL), bd)
        wk = uni((D_MODEL, D_MODEL), bd)
        wv = uni((D_MODEL, D_MODEL), bd)
        layers.append(dict(
            wqkv=jnp.concatenate([wq, wk, wv], axis=1),               # fused (D, 3D)
            bqkv=jnp.zeros((1, 3 * D_MODEL), jnp.float32),
            wo=uni((D_MODEL, D_MODEL), bd), bo=uni((1, D_MODEL), bd),
            ln1w=jnp.ones((1, D_MODEL), jnp.float32), ln1b=jnp.zeros((1, D_MODEL), jnp.float32),
            w1=uni((D_MODEL, N_HIDDEN), bd), b1=uni((1, N_HIDDEN), bd),
            w2=uni((N_HIDDEN, D_MODEL), bh), b2=uni((1, D_MODEL), bh),
            ln2w=jnp.ones((1, D_MODEL), jnp.float32), ln2b=jnp.zeros((1, D_MODEL), jnp.float32),
        ))
    params["layers"] = layers

    # OutputLinear: weight uniform(-0.1, 0.1), bias zero per init_weights(); transposed (D, F).
    params["w_out"] = uni((D_MODEL, N_FEATURES), 0.1)
    params["b_out"] = jnp.zeros((1, N_FEATURES), jnp.float32)
    return params


# ---- forward (single Pallas call) ---------------------------------------------
def transformer_classifier_forward(params, src, src_mask, padding_mask):
    """src: (S, B, n_features), src_mask: (S, S) additive float,
    padding_mask: (B, S) bool (True = ignore key).  Returns (B, S, n_features)."""
    S, B, F = src.shape
    x_flat = jnp.transpose(src, (1, 0, 2)).astype(jnp.float32).reshape(B * S, F)

    # Additive attention mask, pre-broadcast to the head-batched layout (H*B, S, S),
    # index n = h*B + b (heads major) -> mask is hoisted out of the kernel's head math.
    pad_add = jnp.where(padding_mask, jnp.float32(-1e9), jnp.float32(0.0))        # (B, S)
    mask_b = src_mask.astype(jnp.float32)[None, :, :] + pad_add[:, None, :]       # (B, S, S)
    mask_hb = jnp.tile(mask_b, (N_HEADS, 1, 1))                                   # (H*B, S, S)

    # Positional encoding pre-tiled to the flattened (B*S, D) row order (b-major, s-minor).
    pe_flat = jnp.tile(params["pe"], (B, 1))

    args = [x_flat, mask_hb, pe_flat, params["w_in"], params["b_in"]]
    for lp in params["layers"]:
        args += [lp["wqkv"], lp["bqkv"], lp["wo"], lp["bo"],
                 lp["ln1w"], lp["ln1b"], lp["w1"], lp["b1"],
                 lp["w2"], lp["b2"], lp["ln2w"], lp["ln2b"]]
    args += [params["w_out"], params["b_out"]]

    out_flat = pl.pallas_call(
        _fused_forward_kernel,
        out_shape=jax.ShapeDtypeStruct((B * S, N_FEATURES), jnp.float32),
        in_specs=[pl.BlockSpec(memory_space=pltpu.MemorySpace.VMEM) for _ in args],
        out_specs=pl.BlockSpec(memory_space=pltpu.MemorySpace.VMEM),
    )(*args)
    return out_flat.reshape(B, S, N_FEATURES)


# ---- pure-JAX reference (independent per-head formulation) for a sanity check --
def _ref_forward(params, src, src_mask, padding_mask):
    x = jnp.transpose(src, (1, 0, 2)).astype(jnp.float32)
    pad_add = jnp.where(padding_mask, jnp.float32(-1e9), jnp.float32(0.0))
    mask = src_mask.astype(jnp.float32)[None] + pad_add[:, None, :]
    x = (jnp.einsum("bsf,fd->bsd", x, params["w_in"]) + params["b_in"]) * math.sqrt(D_MODEL)
    x = x + params["pe"][None]
    hd = HEAD_DIM
    for lp in params["layers"]:
        wq, wk, wv = (lp["wqkv"][:, 0:D_MODEL], lp["wqkv"][:, D_MODEL:2 * D_MODEL],
                      lp["wqkv"][:, 2 * D_MODEL:])
        bq, bk, bv = (lp["bqkv"][:, 0:D_MODEL], lp["bqkv"][:, D_MODEL:2 * D_MODEL],
                      lp["bqkv"][:, 2 * D_MODEL:])
        q = jnp.einsum("bsd,de->bse", x, wq) + bq
        k = jnp.einsum("bsd,de->bse", x, wk) + bk
        v = jnp.einsum("bsd,de->bse", x, wv) + bv
        heads = []
        for h in range(N_HEADS):
            sl = slice(h * hd, (h + 1) * hd)
            s = jnp.einsum("bqd,bkd->bqk", q[..., sl], k[..., sl]) / math.sqrt(hd) + mask
            p = jax.nn.softmax(s, axis=-1)
            heads.append(jnp.einsum("bqk,bkd->bqd", p, v[..., sl]))
        attn = jnp.einsum("bsd,de->bse", jnp.concatenate(heads, -1), lp["wo"]) + lp["bo"]
        y = x + attn
        y = (y - y.mean(-1, keepdims=True)) / jnp.sqrt(y.var(-1, keepdims=True) + LN_EPS)
        y = y * lp["ln1w"] + lp["ln1b"]
        f = jnp.maximum(jnp.einsum("bsd,dh->bsh", y, lp["w1"]) + lp["b1"], 0.0)
        f = jnp.einsum("bsh,hd->bsd", f, lp["w2"]) + lp["b2"]
        z = y + f
        z = (z - z.mean(-1, keepdims=True)) / jnp.sqrt(z.var(-1, keepdims=True) + LN_EPS)
        x = z * lp["ln2w"] + lp["ln2b"]
    return jnp.einsum("bsd,df->bsf", x, params["w_out"]) + params["b_out"]


def generate_square_subsequent_mask(sz):
    mask = jnp.tril(jnp.ones((sz, sz), dtype=bool))
    return jnp.where(mask, jnp.float32(0.0), jnp.float32(-1e6))


if __name__ == "__main__":
    key = jax.random.PRNGKey(0)
    k_par, k_src = jax.random.split(key)
    params = init_params(k_par)

    src = jax.random.normal(k_src, (SEQ, BATCH, N_FEATURES), jnp.float32)  # seq-first like PyTorch
    src_mask = generate_square_subsequent_mask(SEQ)                        # (S, S) additive causal
    padding_mask = jnp.zeros((BATCH, SEQ), dtype=bool)                     # True = padded key
    padding_mask = padding_mask.at[1, -2:].set(True)

    out = transformer_classifier_forward(params, src, src_mask, padding_mask)
    out = jax.block_until_ready(out)

    ref = jax.block_until_ready(_ref_forward(params, src, src_mask, padding_mask))
    assert out.shape == (BATCH, SEQ, N_FEATURES)
    assert jnp.allclose(out, ref, rtol=2e-3, atol=2e-3), float(jnp.max(jnp.abs(out - ref)))

    print("KERNEL_OK")
</pallas_src>

<mosaic_0001>
module attributes {stable_mosaic.version = 11 : i64} {
  func.func @_fused_forward_kernel(%arg0: memref<16x4xf32, #tpu.memory_space<vmem>>, %arg1: memref<8x8x8xf32, #tpu.memory_space<vmem>>, %arg2: memref<16x32xf32, #tpu.memory_space<vmem>>, %arg3: memref<4x32xf32, #tpu.memory_space<vmem>>, %arg4: memref<1x32xf32, #tpu.memory_space<vmem>>, %arg5: memref<32x96xf32, #tpu.memory_space<vmem>>, %arg6: memref<1x96xf32, #tpu.memory_space<vmem>>, %arg7: memref<32x32xf32, #tpu.memory_space<vmem>>, %arg8: memref<1x32xf32, #tpu.memory_space<vmem>>, %arg9: memref<1x32xf32, #tpu.memory_space<vmem>>, %arg10: memref<1x32xf32, #tpu.memory_space<vmem>>, %arg11: memref<32x32xf32, #tpu.memory_space<vmem>>, %arg12: memref<1x32xf32, #tpu.memory_space<vmem>>, %arg13: memref<32x32xf32, #tpu.memory_space<vmem>>, %arg14: memref<1x32xf32, #tpu.memory_space<vmem>>, %arg15: memref<1x32xf32, #tpu.memory_space<vmem>>, %arg16: memref<1x32xf32, #tpu.memory_space<vmem>>, %arg17: memref<32x96xf32, #tpu.memory_space<vmem>>, %arg18: memref<1x96xf32, #tpu.memory_space<vmem>>, %arg19: memref<32x32xf32, #tpu.memory_space<vmem>>, %arg20: memref<1x32xf32, #tpu.memory_space<vmem>>, %arg21: memref<1x32xf32, #tpu.memory_space<vmem>>, %arg22: memref<1x32xf32, #tpu.memory_space<vmem>>, %arg23: memref<32x32xf32, #tpu.memory_space<vmem>>, %arg24: memref<1x32xf32, #tpu.memory_space<vmem>>, %arg25: memref<32x32xf32, #tpu.memory_space<vmem>>, %arg26: memref<1x32xf32, #tpu.memory_space<vmem>>, %arg27: memref<1x32xf32, #tpu.memory_space<vmem>>, %arg28: memref<1x32xf32, #tpu.memory_space<vmem>>, %arg29: memref<32x4xf32, #tpu.memory_space<vmem>>, %arg30: memref<1x4xf32, #tpu.memory_space<vmem>>, %arg31: memref<16x4xf32, #tpu.memory_space<vmem>>) attributes {dimension_semantics = [], scalar_prefetch = 0 : i64, scratch_operands = 0 : i64, tpu.core_type = #tpu.core_type<tc>} {
    %c0 = arith.constant 0 : index
    %c0_0 = arith.constant 0 : index
    %c0_1 = arith.constant 0 : index
    %0 = vector.load %arg1[%c0, %c0_0, %c0_1] : memref<8x8x8xf32, #tpu.memory_space<vmem>>, vector<8x8x8xf32>
    %c0_2 = arith.constant 0 : index
    %c0_3 = arith.constant 0 : index
    %1 = vector.load %arg0[%c0_2, %c0_3] : memref<16x4xf32, #tpu.memory_space<vmem>>, vector<16x4xf32>
    %c0_4 = arith.constant 0 : index
    %c0_5 = arith.constant 0 : index
    %2 = vector.load %arg3[%c0_4, %c0_5] : memref<4x32xf32, #tpu.memory_space<vmem>>, vector<4x32xf32>
    %cst = arith.constant dense<0.000000e+00> : vector<16x32xf32>
    %3 = tpu.matmul %1, %2, %cst {dimension_numbers = #tpu.dot_dimension_numbers<[1], [0], [0], [1], [0, 0, 1, 1], [], []>} : vector<16x4xf32>, vector<4x32xf32>, vector<16x32xf32> -> vector<16x32xf32>
    %c0_6 = arith.constant 0 : index
    %c0_7 = arith.constant 0 : index
    %4 = vector.load %arg4[%c0_6, %c0_7] : memref<1x32xf32, #tpu.memory_space<vmem>>, vector<1x32xf32>
    %5 = vector.broadcast %4 : vector<1x32xf32> to vector<16x32xf32>
    %6 = arith.addf %3, %5 : vector<16x32xf32>
    %cst_8 = arith.constant 5.65685415 : f32
    %7 = vector.broadcast %cst_8 : f32 to vector<16x32xf32>
    %8 = arith.mulf %6, %7 : vector<16x32xf32>
    %c0_9 = arith.constant 0 : index
    %c0_10 = arith.constant 0 : index
    %9 = vector.load %arg2[%c0_9, %c0_10] : memref<16x32xf32, #tpu.memory_space<vmem>>, vector<16x32xf32>
    %10 = arith.addf %8, %9 : vector<16x32xf32>
    %c0_11 = arith.constant 0 : index
    %c0_12 = arith.constant 0 : index
    %11 = vector.load %arg5[%c0_11, %c0_12] : memref<32x96xf32, #tpu.memory_space<vmem>>, vector<32x96xf32>
    %cst_13 = arith.constant dense<0.000000e+00> : vector<16x96xf32>
    %12 = tpu.matmul %10, %11, %cst_13 {dimension_numbers = #tpu.dot_dimension_numbers<[1], [0], [0], [1], [0, 0, 1, 1], [], []>} : vector<16x32xf32>, vector<32x96xf32>, vector<16x96xf32> -> vector<16x96xf32>
    %c0_14 = arith.constant 0 : index
    %c0_15 = arith.constant 0 : index
    %13 = vector.load %arg6[%c0_14, %c0_15] : memref<1x96xf32, #tpu.memory_space<vmem>>, vector<1x96xf32>
    %14 = vector.broadcast %13 : vector<1x96xf32> to vector<16x96xf32>
    %15 = arith.addf %12, %14 : vector<16x96xf32>
    %16 = vector.extract_strided_slice %15 {offsets = [0, 0], sizes = [16, 32], strides = [1, 1]} : vector<16x96xf32> to vector<16x32xf32>
    %17 = vector.shape_cast %16 : vector<16x32xf32> to vector<2x8x32xf32>
    %18 = vector.extract_strided_slice %15 {offsets = [0, 32], sizes = [16, 32], strides = [1, 1]} : vector<16x96xf32> to vector<16x32xf32>
    %19 = vector.shape_cast %18 : vector<16x32xf32> to vector<2x8x32xf32>
    %20 = vector.extract_strided_slice %15 {offsets = [0, 64], sizes = [16, 32], strides = [1, 1]} : vector<16x96xf32> to vector<16x32xf32>
    %21 = vector.shape_cast %20 : vector<16x32xf32> to vector<2x8x32xf32>
    %22 = vector.extract_strided_slice %17 {offsets = [0, 0, 0], sizes = [2, 8, 8], strides = [1, 1, 1]} : vector<2x8x32xf32> to vector<2x8x8xf32>
    %23 = vector.extract_strided_slice %17 {offsets = [0, 0, 8], sizes = [2, 8, 8], strides = [1, 1, 1]} : vector<2x8x32xf32> to vector<2x8x8xf32>
    %24 = vector.extract_strided_slice %17 {offsets = [0, 0, 16], sizes = [2, 8, 8], strides = [1, 1, 1]} : vector<2x8x32xf32> to vector<2x8x8xf32>
    %25 = vector.extract_strided_slice %17 {offsets = [0, 0, 24], sizes = [2, 8, 8], strides = [1, 1, 1]} : vector<2x8x32xf32> to vector<2x8x8xf32>
    %26 = tpu.concatenate %22, %23, %24, %25 in 0 : vector<2x8x8xf32>, vector<2x8x8xf32>, vector<2x8x8xf32>, vector<2x8x8xf32> -> vector<8x8x8xf32>
    %27 = vector.extract_strided_slice %19 {offsets = [0, 0, 0], sizes = [2, 8, 8], strides = [1, 1, 1]} : vector<2x8x32xf32> to vector<2x8x8xf32>
    %28 = vector.extract_strided_slice %19 {offsets = [0, 0, 8], sizes = [2, 8, 8], strides = [1, 1, 1]} : vector<2x8x32xf32> to vector<2x8x8xf32>
    %29 = vector.extract_strided_slice %19 {offsets = [0, 0, 16], sizes = [2, 8, 8], strides = [1, 1, 1]} : vector<2x8x32xf32> to vector<2x8x8xf32>
    %30 = vector.extract_strided_slice %19 {offsets = [0, 0, 24], sizes = [2, 8, 8], strides = [1, 1, 1]} : vector<2x8x32xf32> to vector<2x8x8xf32>
    %31 = tpu.concatenate %27, %28, %29, %30 in 0 : vector<2x8x8xf32>, vector<2x8x8xf32>, vector<2x8x8xf32>, vector<2x8x8xf32> -> vector<8x8x8xf32>
    %32 = vector.extract_strided_slice %21 {offsets = [0, 0, 0], sizes = [2, 8, 8], strides = [1, 1, 1]} : vector<2x8x32xf32> to vector<2x8x8xf32>
    %33 = vector.extract_strided_slice %21 {offsets = [0, 0, 8], sizes = [2, 8, 8], strides = [1, 1, 1]} : vector<2x8x32xf32> to vector<2x8x8xf32>
    %34 = vector.extract_strided_slice %21 {offsets = [0, 0, 16], sizes = [2, 8, 8], strides = [1, 1, 1]} : vector<2x8x32xf32> to vector<2x8x8xf32>
    %35 = vector.extract_strided_slice %21 {offsets = [0, 0, 24], sizes = [2, 8, 8], strides = [1, 1, 1]} : vector<2x8x32xf32> to vector<2x8x8xf32>
    %36 = tpu.concatenate %32, %33, %34, %35 in 0 : vector<2x8x8xf32>, vector<2x8x8xf32>, vector<2x8x8xf32>, vector<2x8x8xf32> -> vector<8x8x8xf32>
    "tpu.trace_start"() <{level = 10 : i32, message = "nqd,nkd->nqk"}> : () -> ()
    %cst_16 = arith.constant dense<0.000000e+00> : vector<8x8x8xf32>
    %37 = tpu.matmul %26, %31, %cst_16 {dimension_numbers = #tpu.dot_dimension_numbers<[2], [2], [1], [1], [0, 0, 0, 1, 1, 1], [0], [0]>} : vector<8x8x8xf32>, vector<8x8x8xf32>, vector<8x8x8xf32> -> vector<8x8x8xf32>
    "tpu.trace_stop"() : () -> ()
    %cst_17 = arith.constant 0.353553385 : f32
    %38 = vector.broadcast %cst_17 : f32 to vector<8x8x8xf32>
    %39 = arith.mulf %37, %38 : vector<8x8x8xf32>
    %40 = arith.addf %39, %0 : vector<8x8x8xf32>
    %cst_18 = arith.constant dense<0xFF800000> : vector<8x8xf32>
    %41 = vector.multi_reduction <maximumf>, %40, %cst_18 [2] : vector<8x8x8xf32> to vector<8x8xf32>
    %42 = vector.shape_cast %41 : vector<8x8xf32> to vector<8x8x1xf32>
    %43 = vector.broadcast %42 : vector<8x8x1xf32> to vector<8x8x8xf32>
    %44 = arith.subf %40, %43 : vector<8x8x8xf32>
    %45 = math.exp %44 : vector<8x8x8xf32>
    %cst_19 = arith.constant dense<0.000000e+00> : vector<8x8xf32>
    %46 = vector.multi_reduction <add>, %45, %cst_19 [2] : vector<8x8x8xf32> to vector<8x8xf32>
    %47 = vector.shape_cast %46 : vector<8x8xf32> to vector<8x8x1xf32>
    %48 = vector.broadcast %47 : vector<8x8x1xf32> to vector<8x8x8xf32>
    %49 = arith.divf %45, %48 : vector<8x8x8xf32>
    "tpu.trace_start"() <{level = 10 : i32, message = "nqk,nkd->nqd"}> : () -> ()
    %cst_20 = arith.constant dense<0.000000e+00> : vector<8x8x8xf32>
    %50 = tpu.matmul %49, %36, %cst_20 {dimension_numbers = #tpu.dot_dimension_numbers<[2], [1], [1], [2], [0, 0, 0, 1, 1, 2], [0], [0]>} : vector<8x8x8xf32>, vector<8x8x8xf32>, vector<8x8x8xf32> -> vector<8x8x8xf32>
    "tpu.trace_stop"() : () -> ()
    %51 = vector.extract_strided_slice %50 {offsets = [0, 0, 0], sizes = [2, 8, 8], strides = [1, 1, 1]} : vector<8x8x8xf32> to vector<2x8x8xf32>
    %52 = vector.extract_strided_slice %50 {offsets = [2, 0, 0], sizes = [2, 8, 8], strides = [1, 1, 1]} : vector<8x8x8xf32> to vector<2x8x8xf32>
    %53 = vector.extract_strided_slice %50 {offsets = [4, 0, 0], sizes = [2, 8, 8], strides = [1, 1, 1]} : vector<8x8x8xf32> to vector<2x8x8xf32>
    %54 = vector.extract_strided_slice %50 {offsets = [6, 0, 0], sizes = [2, 8, 8], strides = [1, 1, 1]} : vector<8x8x8xf32> to vector<2x8x8xf32>
    %55 = tpu.concatenate %51, %52, %53, %54 in 2 : vector<2x8x8xf32>, vector<2x8x8xf32>, vector<2x8x8xf32>, vector<2x8x8xf32> -> vector<2x8x32xf32>
    %56 = vector.shape_cast %55 : vector<2x8x32xf32> to vector<16x32xf32>
    %c0_21 = arith.constant 0 : index
    %c0_22 = arith.constant 0 : index
    %57 = vector.load %arg7[%c0_21, %c0_22] : memref<32x32xf32, #tpu.memory_space<vmem>>, vector<32x32xf32>
    %cst_23 = arith.constant dense<0.000000e+00> : vector<16x32xf32>
    %58 = tpu.matmul %56, %57, %cst_23 {dimension_numbers = #tpu.dot_dimension_numbers<[1], [0], [0], [1], [0, 0, 1, 1], [], []>} : vector<16x32xf32>, vector<32x32xf32>, vector<16x32xf32> -> vector<16x32xf32>
    %c0_24 = arith.constant 0 : index
    %c0_25 = arith.constant 0 : index
    %59 = vector.load %arg8[%c0_24, %c0_25] : memref<1x32xf32, #tpu.memory_space<vmem>>, vector<1x32xf32>
    %60 = vector.broadcast %59 : vector<1x32xf32> to vector<16x32xf32>
    %61 = arith.addf %58, %60 : vector<16x32xf32>
    %62 = arith.addf %10, %61 : vector<16x32xf32>
    %c0_26 = arith.constant 0 : index
    %c0_27 = arith.constant 0 : index
    %63 = vector.load %arg9[%c0_26, %c0_27] : memref<1x32xf32, #tpu.memory_space<vmem>>, vector<1x32xf32>
    %c0_28 = arith.constant 0 : index
    %c0_29 = arith.constant 0 : index
    %64 = vector.load %arg10[%c0_28, %c0_29] : memref<1x32xf32, #tpu.memory_space<vmem>>, vector<1x32xf32>
    %cst_30 = arith.constant dense<0.000000e+00> : vector<16xf32>
    %65 = vector.multi_reduction <add>, %62, %cst_30 [1] : vector<16x32xf32> to vector<16xf32>
    %66 = vector.shape_cast %65 : vector<16xf32> to vector<16x1xf32>
    %cst_31 = arith.constant 3.200000e+01 : f32
    %67 = vector.broadcast %cst_31 : f32 to vector<16x1xf32>
    %68 = arith.divf %66, %67 : vector<16x1xf32>
    %69 = vector.broadcast %68 : vector<16x1xf32> to vector<16x32xf32>
    %70 = arith.subf %62, %69 : vector<16x32xf32>
    %71 = arith.mulf %70, %70 : vector<16x32xf32>
    %cst_32 = arith.constant dense<0.000000e+00> : vector<16xf32>
    %72 = vector.multi_reduction <add>, %71, %cst_32 [1] : vector<16x32xf32> to vector<16xf32>
    %73 = vector.shape_cast %72 : vector<16xf32> to vector<16x1xf32>
    %cst_33 = arith.constant 3.200000e+01 : f32
    %74 = vector.broadcast %cst_33 : f32 to vector<16x1xf32>
    %75 = arith.divf %73, %74 : vector<16x1xf32>
    %76 = vector.broadcast %68 : vector<16x1xf32> to vector<16x32xf32>
    %77 = arith.subf %62, %76 : vector<16x32xf32>
    %cst_34 = arith.constant 9.99999974E-6 : f32
    %78 = vector.broadcast %cst_34 : f32 to vector<16x1xf32>
    %79 = arith.addf %75, %78 : vector<16x1xf32>
    %80 = math.rsqrt %79 : vector<16x1xf32>
    %81 = vector.broadcast %80 : vector<16x1xf32> to vector<16x32xf32>
    %82 = arith.mulf %77, %81 : vector<16x32xf32>
    %83 = vector.broadcast %63 : vector<1x32xf32> to vector<16x32xf32>
    %84 = arith.mulf %82, %83 : vector<16x32xf32>
    %85 = vector.broadcast %64 : vector<1x32xf32> to vector<16x32xf32>
    %86 = arith.addf %84, %85 : vector<16x32xf32>
    %c0_35 = arith.constant 0 : index
    %c0_36 = arith.constant 0 : index
    %87 = vector.load %arg11[%c0_35, %c0_36] : memref<32x32xf32, #tpu.memory_space<vmem>>, vector<32x32xf32>
    %cst_37 = arith.constant dense<0.000000e+00> : vector<16x32xf32>
    %88 = tpu.matmul %86, %87, %cst_37 {dimension_numbers = #tpu.dot_dimension_numbers<[1], [0], [0], [1], [0, 0, 1, 1], [], []>} : vector<16x32xf32>, vector<32x32xf32>, vector<16x32xf32> -> vector<16x32xf32>
    %c0_38 = arith.constant 0 : index
    %c0_39 = arith.constant 0 : index
    %89 = vector.load %arg12[%c0_38, %c0_39] : memref<1x32xf32, #tpu.memory_space<vmem>>, vector<1x32xf32>
    %90 = vector.broadcast %89 : vector<1x32xf32> to vector<16x32xf32>
    %91 = arith.addf %88, %90 : vector<16x32xf32>
    %cst_40 = arith.constant 0.000000e+00 : f32
    %92 = vector.broadcast %cst_40 : f32 to vector<16x32xf32>
    %93 = arith.maximumf %91, %92 : vector<16x32xf32>
    %c0_41 = arith.constant 0 : index
    %c0_42 = arith.constant 0 : index
    %94 = vector.load %arg13[%c0_41, %c0_42] : memref<32x32xf32, #tpu.memory_space<vmem>>, vector<32x32xf32>
    %cst_43 = arith.constant dense<0.000000e+00> : vector<16x32xf32>
    %95 = tpu.matmul %93, %94, %cst_43 {dimension_numbers = #tpu.dot_dimension_numbers<[1], [0], [0], [1], [0, 0, 1, 1], [], []>} : vector<16x32xf32>, vector<32x32xf32>, vector<16x32xf32> -> vector<16x32xf32>
    %c0_44 = arith.constant 0 : index
    %c0_45 = arith.constant 0 : index
    %96 = vector.load %arg14[%c0_44, %c0_45] : memref<1x32xf32, #tpu.memory_space<vmem>>, vector<1x32xf32>
    %97 = vector.broadcast %96 : vector<1x32xf32> to vector<16x32xf32>
    %98 = arith.addf %95, %97 : vector<16x32xf32>
    %99 = arith.addf %86, %98 : vector<16x32xf32>
    %c0_46 = arith.constant 0 : index
    %c0_47 = arith.constant 0 : index
    %100 = vector.load %arg15[%c0_46, %c0_47] : memref<1x32xf32, #tpu.memory_space<vmem>>, vector<1x32xf32>
    %c0_48 = arith.constant 0 : index
    %c0_49 = arith.constant 0 : index
    %101 = vector.load %arg16[%c0_48, %c0_49] : memref<1x32xf32, #tpu.memory_space<vmem>>, vector<1x32xf32>
    %cst_50 = arith.constant dense<0.000000e+00> : vector<16xf32>
    %102 = vector.multi_reduction <add>, %99, %cst_50 [1] : vector<16x32xf32> to vector<16xf32>
    %103 = vector.shape_cast %102 : vector<16xf32> to vector<16x1xf32>
    %cst_51 = arith.constant 3.200000e+01 : f32
    %104 = vector.broadcast %cst_51 : f32 to vector<16x1xf32>
    %105 = arith.divf %103, %104 : vector<16x1xf32>
    %106 = vector.broadcast %105 : vector<16x1xf32> to vector<16x32xf32>
    %107 = arith.subf %99, %106 : vector<16x32xf32>
    %108 = arith.mulf %107, %107 : vector<16x32xf32>
    %cst_52 = arith.constant dense<0.000000e+00> : vector<16xf32>
    %109 = vector.multi_reduction <add>, %108, %cst_52 [1] : vector<16x32xf32> to vector<16xf32>
    %110 = vector.shape_cast %109 : vector<16xf32> to vector<16x1xf32>
    %cst_53 = arith.constant 3.200000e+01 : f32
    %111 = vector.broadcast %cst_53 : f32 to vector<16x1xf32>
    %112 = arith.divf %110, %111 : vector<16x1xf32>
    %113 = vector.broadcast %105 : vector<16x1xf32> to vector<16x32xf32>
    %114 = arith.subf %99, %113 : vector<16x32xf32>
    %cst_54 = arith.constant 9.99999974E-6 : f32
    %115 = vector.broadcast %cst_54 : f32 to vector<16x1xf32>
    %116 = arith.addf %112, %115 : vector<16x1xf32>
    %117 = math.rsqrt %116 : vector<16x1xf32>
    %118 = vector.broadcast %117 : vector<16x1xf32> to vector<16x32xf32>
    %119 = arith.mulf %114, %118 : vector<16x32xf32>
    %120 = vector.broadcast %100 : vector<1x32xf32> to vector<16x32xf32>
    %121 = arith.mulf %119, %120 : vector<16x32xf32>
    %122 = vector.broadcast %101 : vector<1x32xf32> to vector<16x32xf32>
    %123 = arith.addf %121, %122 : vector<16x32xf32>
    %c0_55 = arith.constant 0 : index
    %c0_56 = arith.constant 0 : index
    %124 = vector.load %arg17[%c0_55, %c0_56] : memref<32x96xf32, #tpu.memory_space<vmem>>, vector<32x96xf32>
    %cst_57 = arith.constant dense<0.000000e+00> : vector<16x96xf32>
    %125 = tpu.matmul %123, %124, %cst_57 {dimension_numbers = #tpu.dot_dimension_numbers<[1], [0], [0], [1], [0, 0, 1, 1], [], []>} : vector<16x32xf32>, vector<32x96xf32>, vector<16x96xf32> -> vector<16x96xf32>
    %c0_58 = arith.constant 0 : index
    %c0_59 = arith.constant 0 : index
    %126 = vector.load %arg18[%c0_58, %c0_59] : memref<1x96xf32, #tpu.memory_space<vmem>>, vector<1x96xf32>
    %127 = vector.broadcast %126 : vector<1x96xf32> to vector<16x96xf32>
    %128 = arith.addf %125, %127 : vector<16x96xf32>
    %129 = vector.extract_strided_slice %128 {offsets = [0, 0], sizes = [16, 32], strides = [1, 1]} : vector<16x96xf32> to vector<16x32xf32>
    %130 = vector.shape_cast %129 : vector<16x32xf32> to vector<2x8x32xf32>
    %131 = vector.extract_strided_slice %128 {offsets = [0, 32], sizes = [16, 32], strides = [1, 1]} : vector<16x96xf32> to vector<16x32xf32>
    %132 = vector.shape_cast %131 : vector<16x32xf32> to vector<2x8x32xf32>
    %133 = vector.extract_strided_slice %128 {offsets = [0, 64], sizes = [16, 32], strides = [1, 1]} : vector<16x96xf32> to vector<16x32xf32>
    %134 = vector.shape_cast %133 : vector<16x32xf32> to vector<2x8x32xf32>
    %135 = vector.extract_strided_slice %130 {offsets = [0, 0, 0], sizes = [2, 8, 8], strides = [1, 1, 1]} : vector<2x8x32xf32> to vector<2x8x8xf32>
    %136 = vector.extract_strided_slice %130 {offsets = [0, 0, 8], sizes = [2, 8, 8], strides = [1, 1, 1]} : vector<2x8x32xf32> to vector<2x8x8xf32>
    %137 = vector.extract_strided_slice %130 {offsets = [0, 0, 16], sizes = [2, 8, 8], strides = [1, 1, 1]} : vector<2x8x32xf32> to vector<2x8x8xf32>
    %138 = vector.extract_strided_slice %130 {offsets = [0, 0, 24], sizes = [2, 8, 8], strides = [1, 1, 1]} : vector<2x8x32xf32> to vector<2x8x8xf32>
    %139 = tpu.concatenate %135, %136, %137, %138 in 0 : vector<2x8x8xf32>, vector<2x8x8xf32>, vector<2x8x8xf32>, vector<2x8x8xf32> -> vector<8x8x8xf32>
    %140 = vector.extract_strided_slice %132 {offsets = [0, 0, 0], sizes = [2, 8, 8], strides = [1, 1, 1]} : vector<2x8x32xf32> to vector<2x8x8xf32>
    %141 = vector.extract_strided_slice %132 {offsets = [0, 0, 8], sizes = [2, 8, 8], strides = [1, 1, 1]} : vector<2x8x32xf32> to vector<2x8x8xf32>
    %142 = vector.extract_strided_slice %132 {offsets = [0, 0, 16], sizes = [2, 8, 8], strides = [1, 1, 1]} : vector<2x8x32xf32> to vector<2x8x8xf32>
    %143 = vector.extract_strided_slice %132 {offsets = [0, 0, 24], sizes = [2, 8, 8], strides = [1, 1, 1]} : vector<2x8x32xf32> to vector<2x8x8xf32>
    %144 = tpu.concatenate %140, %141, %142, %143 in 0 : vector<2x8x8xf32>, vector<2x8x8xf32>, vector<2x8x8xf32>, vector<2x8x8xf32> -> vector<8x8x8xf32>
    %145 = vector.extract_strided_slice %134 {offsets = [0, 0, 0], sizes = [2, 8, 8], strides = [1, 1, 1]} : vector<2x8x32xf32> to vector<2x8x8xf32>
    %146 = vector.extract_strided_slice %134 {offsets = [0, 0, 8], sizes = [2, 8, 8], strides = [1, 1, 1]} : vector<2x8x32xf32> to vector<2x8x8xf32>
    %147 = vector.extract_strided_slice %134 {offsets = [0, 0, 16], sizes = [2, 8, 8], strides = [1, 1, 1]} : vector<2x8x32xf32> to vector<2x8x8xf32>
    %148 = vector.extract_strided_slice %134 {offsets = [0, 0, 24], sizes = [2, 8, 8], strides = [1, 1, 1]} : vector<2x8x32xf32> to vector<2x8x8xf32>
    %149 = tpu.concatenate %145, %146, %147, %148 in 0 : vector<2x8x8xf32>, vector<2x8x8xf32>, vector<2x8x8xf32>, vector<2x8x8xf32> -> vector<8x8x8xf32>
    "tpu.trace_start"() <{level = 10 : i32, message = "nqd,nkd->nqk"}> : () -> ()
    %cst_60 = arith.constant dense<0.000000e+00> : vector<8x8x8xf32>
    %150 = tpu.matmul %139, %144, %cst_60 {dimension_numbers = #tpu.dot_dimension_numbers<[2], [2], [1], [1], [0, 0, 0, 1, 1, 1], [0], [0]>} : vector<8x8x8xf32>, vector<8x8x8xf32>, vector<8x8x8xf32> -> vector<8x8x8xf32>
    "tpu.trace_stop"() : () -> ()
    %cst_61 = arith.constant 0.353553385 : f32
    %151 = vector.broadcast %cst_61 : f32 to vector<8x8x8xf32>
    %152 = arith.mulf %150, %151 : vector<8x8x8xf32>
    %153 = arith.addf %152, %0 : vector<8x8x8xf32>
    %cst_62 = arith.constant dense<0xFF800000> : vector<8x8xf32>
    %154 = vector.multi_reduction <maximumf>, %153, %cst_62 [2] : vector<8x8x8xf32> to vector<8x8xf32>
    %155 = vector.shape_cast %154 : vector<8x8xf32> to vector<8x8x1xf32>
    %156 = vector.broadcast %155 : vector<8x8x1xf32> to vector<8x8x8xf32>
    %157 = arith.subf %153, %156 : vector<8x8x8xf32>
    %158 = math.exp %157 : vector<8x8x8xf32>
    %cst_63 = arith.constant dense<0.000000e+00> : vector<8x8xf32>
    %159 = vector.multi_reduction <add>, %158, %cst_63 [2] : vector<8x8x8xf32> to vector<8x8xf32>
    %160 = vector.shape_cast %159 : vector<8x8xf32> to vector<8x8x1xf32>
    %161 = vector.broadcast %160 : vector<8x8x1xf32> to vector<8x8x8xf32>
    %162 = arith.divf %158, %161 : vector<8x8x8xf32>
    "tpu.trace_start"() <{level = 10 : i32, message = "nqk,nkd->nqd"}> : () -> ()
    %cst_64 = arith.constant dense<0.000000e+00> : vector<8x8x8xf32>
    %163 = tpu.matmul %162, %149, %cst_64 {dimension_numbers = #tpu.dot_dimension_numbers<[2], [1], [1], [2], [0, 0, 0, 1, 1, 2], [0], [0]>} : vector<8x8x8xf32>, vector<8x8x8xf32>, vector<8x8x8xf32> -> vector<8x8x8xf32>
    "tpu.trace_stop"() : () -> ()
    %164 = vector.extract_strided_slice %163 {offsets = [0, 0, 0], sizes = [2, 8, 8], strides = [1, 1, 1]} : vector<8x8x8xf32> to vector<2x8x8xf32>
    %165 = vector.extract_strided_slice %163 {offsets = [2, 0, 0], sizes = [2, 8, 8], strides = [1, 1, 1]} : vector<8x8x8xf32> to vector<2x8x8xf32>
    %166 = vector.extract_strided_slice %163 {offsets = [4, 0, 0], sizes = [2, 8, 8], strides = [1, 1, 1]} : vector<8x8x8xf32> to vector<2x8x8xf32>
    %167 = vector.extract_strided_slice %163 {offsets = [6, 0, 0], sizes = [2, 8, 8], strides = [1, 1, 1]} : vector<8x8x8xf32> to vector<2x8x8xf32>
    %168 = tpu.concatenate %164, %165, %166, %167 in 2 : vector<2x8x8xf32>, vector<2x8x8xf32>, vector<2x8x8xf32>, vector<2x8x8xf32> -> vector<2x8x32xf32>
    %169 = vector.shape_cast %168 : vector<2x8x32xf32> to vector<16x32xf32>
    %c0_65 = arith.constant 0 : index
    %c0_66 = arith.constant 0 : index
    %170 = vector.load %arg19[%c0_65, %c0_66] : memref<32x32xf32, #tpu.memory_space<vmem>>, vector<32x32xf32>
    %cst_67 = arith.constant dense<0.000000e+00> : vector<16x32xf32>
    %171 = tpu.matmul %169, %170, %cst_67 {dimension_numbers = #tpu.dot_dimension_numbers<[1], [0], [0], [1], [0, 0, 1, 1], [], []>} : vector<16x32xf32>, vector<32x32xf32>, vector<16x32xf32> -> vector<16x32xf32>
    %c0_68 = arith.constant 0 : index
    %c0_69 = arith.constant 0 : index
    %172 = vector.load %arg20[%c0_68, %c0_69] : memref<1x32xf32, #tpu.memory_space<vmem>>, vector<1x32xf32>
    %173 = vector.broadcast %172 : vector<1x32xf32> to vector<16x32xf32>
    %174 = arith.addf %171, %173 : vector<16x32xf32>
    %175 = arith.addf %123, %174 : vector<16x32xf32>
    %c0_70 = arith.constant 0 : index
    %c0_71 = arith.constant 0 : index
    %176 = vector.load %arg21[%c0_70, %c0_71] : memref<1x32xf32, #tpu.memory_space<vmem>>, vector<1x32xf32>
    %c0_72 = arith.constant 0 : index
    %c0_73 = arith.constant 0 : index
    %177 = vector.load %arg22[%c0_72, %c0_73] : memref<1x32xf32, #tpu.memory_space<vmem>>, vector<1x32xf32>
    %cst_74 = arith.constant dense<0.000000e+00> : vector<16xf32>
    %178 = vector.multi_reduction <add>, %175, %cst_74 [1] : vector<16x32xf32> to vector<16xf32>
    %179 = vector.shape_cast %178 : vector<16xf32> to vector<16x1xf32>
    %cst_75 = arith.constant 3.200000e+01 : f32
    %180 = vector.broadcast %cst_75 : f32 to vector<16x1xf32>
    %181 = arith.divf %179, %180 : vector<16x1xf32>
    %182 = vector.broadcast %181 : vector<16x1xf32> to vector<16x32xf32>
    %183 = arith.subf %175, %182 : vector<16x32xf32>
    %184 = arith.mulf %183, %183 : vector<16x32xf32>
    %cst_76 = arith.constant dense<0.000000e+00> : vector<16xf32>
    %185 = vector.multi_reduction <add>, %184, %cst_76 [1] : vector<16x32xf32> to vector<16xf32>
    %186 = vector.shape_cast %185 : vector<16xf32> to vector<16x1xf32>
    %cst_77 = arith.constant 3.200000e+01 : f32
    %187 = vector.broadcast %cst_77 : f32 to vector<16x1xf32>
    %188 = arith.divf %186, %187 : vector<16x1xf32>
    %189 = vector.broadcast %181 : vector<16x1xf32> to vector<16x32xf32>
    %190 = arith.subf %175, %189 : vector<16x32xf32>
    %cst_78 = arith.constant 9.99999974E-6 : f32
    %191 = vector.broadcast %cst_78 : f32 to vector<16x1xf32>
    %192 = arith.addf %188, %191 : vector<16x1xf32>
    %193 = math.rsqrt %192 : vector<16x1xf32>
    %194 = vector.broadcast %193 : vector<16x1xf32> to vector<16x32xf32>
    %195 = arith.mulf %190, %194 : vector<16x32xf32>
    %196 = vector.broadcast %176 : vector<1x32xf32> to vector<16x32xf32>
    %197 = arith.mulf %195, %196 : vector<16x32xf32>
    %198 = vector.broadcast %177 : vector<1x32xf32> to vector<16x32xf32>
    %199 = arith.addf %197, %198 : vector<16x32xf32>
    %c0_79 = arith.constant 0 : index
    %c0_80 = arith.constant 0 : index
    %200 = vector.load %arg23[%c0_79, %c0_80] : memref<32x32xf32, #tpu.memory_space<vmem>>, vector<32x32xf32>
    %cst_81 = arith.constant dense<0.000000e+00> : vector<16x32xf32>
    %201 = tpu.matmul %199, %200, %cst_81 {dimension_numbers = #tpu.dot_dimension_numbers<[1], [0], [0], [1], [0, 0, 1, 1], [], []>} : vector<16x32xf32>, vector<32x32xf32>, vector<16x32xf32> -> vector<16x32xf32>
    %c0_82 = arith.constant 0 : index
    %c0_83 = arith.constant 0 : index
    %202 = vector.load %arg24[%c0_82, %c0_83] : memref<1x32xf32, #tpu.memory_space<vmem>>, vector<1x32xf32>
    %203 = vector.broadcast %202 : vector<1x32xf32> to vector<16x32xf32>
    %204 = arith.addf %201, %203 : vector<16x32xf32>
    %cst_84 = arith.constant 0.000000e+00 : f32
    %205 = vector.broadcast %cst_84 : f32 to vector<16x32xf32>
    %206 = arith.maximumf %204, %205 : vector<16x32xf32>
    %c0_85 = arith.constant 0 : index
    %c0_86 = arith.constant 0 : index
    %207 = vector.load %arg25[%c0_85, %c0_86] : memref<32x32xf32, #tpu.memory_space<vmem>>, vector<32x32xf32>
    %cst_87 = arith.constant dense<0.000000e+00> : vector<16x32xf32>
    %208 = tpu.matmul %206, %207, %cst_87 {dimension_numbers = #tpu.dot_dimension_numbers<[1], [0], [0], [1], [0, 0, 1, 1], [], []>} : vector<16x32xf32>, vector<32x32xf32>, vector<16x32xf32> -> vector<16x32xf32>
    %c0_88 = arith.constant 0 : index
    %c0_89 = arith.constant 0 : index
    %209 = vector.load %arg26[%c0_88, %c0_89] : memref<1x32xf32, #tpu.memory_space<vmem>>, vector<1x32xf32>
    %210 = vector.broadcast %209 : vector<1x32xf32> to vector<16x32xf32>
    %211 = arith.addf %208, %210 : vector<16x32xf32>
    %212 = arith.addf %199, %211 : vector<16x32xf32>
    %c0_90 = arith.constant 0 : index
    %c0_91 = arith.constant 0 : index
    %213 = vector.load %arg27[%c0_90, %c0_91] : memref<1x32xf32, #tpu.memory_space<vmem>>, vector<1x32xf32>
    %c0_92 = arith.constant 0 : index
    %c0_93 = arith.constant 0 : index
    %214 = vector.load %arg28[%c0_92, %c0_93] : memref<1x32xf32, #tpu.memory_space<vmem>>, vector<1x32xf32>
    %cst_94 = arith.constant dense<0.000000e+00> : vector<16xf32>
    %215 = vector.multi_reduction <add>, %212, %cst_94 [1] : vector<16x32xf32> to vector<16xf32>
    %216 = vector.shape_cast %215 : vector<16xf32> to vector<16x1xf32>
    %cst_95 = arith.constant 3.200000e+01 : f32
    %217 = vector.broadcast %cst_95 : f32 to vector<16x1xf32>
    %218 = arith.divf %216, %217 : vector<16x1xf32>
    %219 = vector.broadcast %218 : vector<16x1xf32> to vector<16x32xf32>
    %220 = arith.subf %212, %219 : vector<16x32xf32>
    %221 = arith.mulf %220, %220 : vector<16x32xf32>
    %cst_96 = arith.constant dense<0.000000e+00> : vector<16xf32>
    %222 = vector.multi_reduction <add>, %221, %cst_96 [1] : vector<16x32xf32> to vector<16xf32>
    %223 = vector.shape_cast %222 : vector<16xf32> to vector<16x1xf32>
    %cst_97 = arith.constant 3.200000e+01 : f32
    %224 = vector.broadcast %cst_97 : f32 to vector<16x1xf32>
    %225 = arith.divf %223, %224 : vector<16x1xf32>
    %226 = vector.broadcast %218 : vector<16x1xf32> to vector<16x32xf32>
    %227 = arith.subf %212, %226 : vector<16x32xf32>
    %cst_98 = arith.constant 9.99999974E-6 : f32
    %228 = vector.broadcast %cst_98 : f32 to vector<16x1xf32>
    %229 = arith.addf %225, %228 : vector<16x1xf32>
    %230 = math.rsqrt %229 : vector<16x1xf32>
    %231 = vector.broadcast %230 : vector<16x1xf32> to vector<16x32xf32>
    %232 = arith.mulf %227, %231 : vector<16x32xf32>
    %233 = vector.broadcast %213 : vector<1x32xf32> to vector<16x32xf32>
    %234 = arith.mulf %232, %233 : vector<16x32xf32>
    %235 = vector.broadcast %214 : vector<1x32xf32> to vector<16x32xf32>
    %236 = arith.addf %234, %235 : vector<16x32xf32>
    %c0_99 = arith.constant 0 : index
    %c0_100 = arith.constant 0 : index
    %237 = vector.load %arg29[%c0_99, %c0_100] : memref<32x4xf32, #tpu.memory_space<vmem>>, vector<32x4xf32>
    %cst_101 = arith.constant dense<0.000000e+00> : vector<16x4xf32>
    %238 = tpu.matmul %236, %237, %cst_101 {dimension_numbers = #tpu.dot_dimension_numbers<[1], [0], [0], [1], [0, 0, 1, 1], [], []>} : vector<16x32xf32>, vector<32x4xf32>, vector<16x4xf32> -> vector<16x4xf32>
    %c0_102 = arith.constant 0 : index
    %c0_103 = arith.constant 0 : index
    %239 = vector.load %arg30[%c0_102, %c0_103] : memref<1x4xf32, #tpu.memory_space<vmem>>, vector<1x4xf32>
    %240 = vector.broadcast %239 : vector<1x4xf32> to vector<16x4xf32>
    %241 = arith.addf %238, %240 : vector<16x4xf32>
    %c0_104 = arith.constant 0 : index
    %c0_105 = arith.constant 0 : index
    %242 = vector.load %arg31[%c0_104, %c0_105] : memref<16x4xf32, #tpu.memory_space<vmem>>, vector<16x4xf32>
    tpu.vector_store %arg31[%c0_104, %c0_105], %241 {strides = array<i32>} : memref<16x4xf32, #tpu.memory_space<vmem>>, vector<16x4xf32>,
    return
  }
}

</mosaic_0001>

<bundles_post_ra>
// kernel: tpu_custom_call.1
= control target key start
LH: loop header
LB: loop body
LE: loop exit
PB: predicated region body
PF: predicated region fallthrough
CT: control target
= control target key end

     0   :  { %s5284_s6 = smov 1   ;;  %s5285_s10 = smov 2   ;;  %s6108_s0 = inlined_call_operand.smem [shape: u32[32], index: -1, kind: input, shape index: {}] }
   0x1   :  { %s5350_s5 = sld [smem:[%s6108_s0]]   ;;  %s5286_s14 = smov 3  }
   0x2   :  { %s5355_s9 = sld [smem:[%s6108_s0 + %s5284_s6]]   ;;  %s5287_s18 = smov 4  }
   0x3   :  { %s5360_s13 = sld [smem:[%s6108_s0 + %s5285_s10]]   ;;  %s5288_s22 = smov 5  }
   0x4   :  { %s5365_s17 = sld [smem:[%s6108_s0 + %s5286_s14]]   ;;  %s5289_s26 = smov 6  }
   0x5   :  { %s5370_s21 = sld [smem:[%s6108_s0 + %s5287_s18]]   ;;  %s5290_s30 = smov 7  }
   0x6   :  { %s5375_s25 = sld [smem:[%s6108_s0 + %s5288_s22]]   ;;  %s5291_s4 = smov 8  }
   0x7   :  { %6116 = sst [smem:[#allocation36_spill]] %s5350_s5  ;;  %s5292_s10 = smov 9  }
   0x8   :  { %s5380_s29 = sld [smem:[%s6108_s0 + %s5289_s26]]   ;;  %s5293_s15 = smov 10  }
   0x9   :  { %s5385_s3 = sld [smem:[%s6108_s0 + %s5290_s30]]   ;;  %s5294_s20 = smov 11  }
   0xa   :  { %s5390_s8 = sld [smem:[%s6108_s0 + %s5291_s4]]   ;;  %s5295_s26 = smov 12  }
   0xb   :  { %6117 = sst [smem:[#allocation37_spill]] %s5370_s21  ;;  %s5296_s1 = smov 13  }
   0xc   :  { %6118 = sst [smem:[#allocation38_spill]] %s5375_s25  ;;  %s5297_s7 = smov 14  }
   0xd   :  { %s5395_s14 = sld [smem:[%s6108_s0 + %s5292_s10]]   ;;  %s5299_s22 = smov 16  }
   0xe   :  { %s5400_s19 = sld [smem:[%s6108_s0 + %s5293_s15]]   ;;  %s5298_s15 = smov 15  }
   0xf   :  { %6119 = sst [smem:[#allocation39_spill]] %s5385_s3  ;;  %s5300_s28 = smov 17  }
  0x10   :  { %s5405_s24 = sld [smem:[%s6108_s0 + %s5294_s20]]  }
  0x11   :  { %s5410_s30 = sld [smem:[%s6108_s0 + %s5295_s26]]  }
  0x12   :  { %s5415_s6 = sld [smem:[%s6108_s0 + %s5296_s1]]  }
  0x13   :  { %s5420_s12 = sld [smem:[%s6108_s0 + %s5297_s7]]   ;;  %s5301_s7 = smov 18  }
  0x14   :  { %s5425_s20 = sld [smem:[%s6108_s0 + %s5298_s15]]   ;;  %s5302_s15 = smov 19  }
  0x15   :  { %s5430_s27 = sld [smem:[%s6108_s0 + %s5299_s22]]   ;;  %s5303_s22 = smov 20  }
  0x16   :  { %6120 = sst [smem:[#allocation40_spill]] %s5405_s24 }
  0x17   :  { %6121 = sst [smem:[#allocation41_spill]] %s5410_s30 }
  0x18   :  { %s5435_s4 = sld [smem:[%s6108_s0 + %s5300_s28]]   ;;  %s5304_s28 = smov 21  }
  0x19   :  { %6122 = sst [smem:[#allocation42_spill]] %s5420_s12 }
  0x1a   :  { %s5440_s12 = sld [smem:[%s6108_s0 + %s5301_s7]]   ;;  %s5305_s7 = smov 22  }
  0x1b   :  { %s5445_s30 = sld [smem:[%s6108_s0 + %s5302_s15]]   ;;  %s5306_s15 = smov 23  }
  0x1c   :  { %s5450_s24 = sld [smem:[%s6108_s0 + %s5303_s22]]   ;;  %s5307_s22 = smov 24  }
  0x1d   :  { %s5455_s3 = sld [smem:[%s6108_s0 + %s5304_s28]]   ;;  %s5308_s28 = smov 25  }
  0x1e   :  { %s5460_s21 = sld [smem:[%s6108_s0 + %s5305_s7]]   ;;  %s5309_s7 = smov 26  }
  0x1f   :  { %s5465_s25 = sld [smem:[%s6108_s0 + %s5306_s15]]   ;;  %s5310_s15 = smov 27  }
  0x20   :  { %s5470_s5 = sld [smem:[%s6108_s0 + %s5307_s22]]   ;;  %s5311_s22 = smov 28  }
  0x23   :  { %6123 = sst [smem:[#allocation43_spill]] %s5455_s3 }
  0x24   :  { %6124 = sst [smem:[#allocation44_spill]] %s5460_s21 }
  0x25   :  { %6125 = sst [smem:[#allocation45_spill]] %s5465_s25 }
  0x26   :  { %6126 = sst [smem:[#allocation46_spill]] %s5470_s5 }
  0x27   :  { %s5475_s3 = sld [smem:[%s6108_s0 + %s5308_s28]]   ;;  %s5312_s28 = smov 29  }
  0x28   :  { %s5480_s21 = sld [smem:[%s6108_s0 + %s5309_s7]]   ;;  %s5313_s7 = smov 30  }
  0x29   :  { %s5485_s25 = sld [smem:[%s6108_s0 + %s5310_s15]]   ;;  %s5314_s15 = smov 31  }
  0x2a   :  { %s5490_s5 = sld [smem:[%s6108_s0 + %s5311_s22]]  }
  0x2d   :  { %6127 = sst [smem:[#allocation47_spill]] %s5475_s3 }
  0x2e   :  { %6128 = sst [smem:[#allocation48_spill]] %s5480_s21 }
  0x2f   :  { %6129 = sst [smem:[#allocation49_spill]] %s5485_s25 }
  0x30   :  { %s5495_s3 = sld [smem:[%s6108_s0 + %s5312_s28]]  }
  0x31   :  { %s5500_s21 = sld [smem:[%s6108_s0 + %s5313_s7]]  }
  0x32   :  { %s5505_s25 = sld [smem:[%s6108_s0 + %s5314_s15]]  }
  0x33   :  { %68 = vsyncpa [#allocation3], 0 }
  0x34   :  { %69 = vsyncpa [#allocation5], 0 }
  0x35   :  { %70 = vsyncpa [#allocation8], 0 }
  0x36   :  { %71 = vsyncpa [#allocation11], 0 }
  0x37   :  { %72 = vsyncpa [#allocation14], 0 }
  0x38   :  { %73 = vsyncpa [#allocation17], 0 }
  0x39   :  { %74 = vsyncpa [#allocation20], 0 }
  0x3a   :  { %75 = vsyncpa [#allocation23], 0 }
  0x3b   :  { %76 = vsyncpa [#allocation26], 0  ;;  %s5315_s22 = smov [#allocation4]   ;;  %s5316_s26 = smov [#allocation7]  }
  0x3c   :  { %s96_s23 = sshll.u32 %s5315_s22, 4  ;;  %s123_s28 = sshll.u32 %s5316_s26, 4  ;;  %s97_s23 = int_to_ptr.vmem [resolvable:$true] %s96_s23  ;;  %s5507_s28 = int_to_ptr.vmem [resolvable:$true] %s123_s28 }
  0x3d   :  { %s4914_s0 = scalar_lea.hbm %s5360_s13, 256 }
  0x3e   :  { %p4915_p0 = scmp.ne.s32.totalorder %s5360_s13, %s4914_s0  ;;  %p4918_p1 = scmp.lt.u32.totalorder %s4914_s0, %s5360_s13 }
  0x40   :  { %p4920_p2 = pnand %p4918_p1, %p4915_p0 }
  0x42   :  { %4923 = shalt.err (!%p4920_p2)
}
  0x43   :  { %s4924_s1 = scalar_lea.vmem %s97_s23, 256  ;;  %p4929_p4 = scmp.lt.s32.totalorder %s97_s23, %s97_s23 }
  0x44   :  { %p4925_p3 = scmp.ne.s32.totalorder %s97_s23, %s4924_s1  ;;  %p4930_p5 = scmp.lt.s32.totalorder %s4924_s1, %s4924_s1 }
  0x46   :  { %p4931_p6 = por %p4930_p5, %p4929_p4 }
  0x48   :  { %p4932_p7 = pnand %p4931_p6, %p4925_p3 }
  0x4a   :  { %4935 = shalt.err (!%p4932_p7)
}
  0x4b   :  { %s5317_s2 = smov 128   ;;  %s5318_s7 = smov 8  }
  0x4c   :  { %102 = dma.hbm_to_vmem [thread:$0]  %s5360_s13, 256, %s97_s23, [#allocation5], %s5317_s2, %s5317_s2, %s5318_s7  }
  0x4d   :  { %s4936_s10 = scalar_lea.hbm %s5380_s29, 16 }
  0x4e   :  { %p4937_p8 = scmp.ne.s32.totalorder %s5380_s29, %s4936_s10  ;;  %p4940_p9 = scmp.lt.u32.totalorder %s4936_s10, %s5380_s29 }
  0x50   :  { %p4942_p10 = pnand %p4940_p9, %p4937_p8 }
  0x52   :  { %4945 = shalt.err (!%p4942_p10)
}
  0x53   :  { %s4946_s11 = scalar_lea.vmem %s5507_s28, 16  ;;  %s4950_s15 = scalar_lea.vmem %s5507_s28, 32 }
  0x54   :  { %p4947_p11 = scmp.ne.s32.totalorder %s5507_s28, %s4946_s11  ;;  %p4951_p12 = scmp.lt.s32.totalorder %s5507_s28, %s5507_s28 }
  0x55   :  { %p4952_p13 = scmp.lt.s32.totalorder %s4950_s15, %s4946_s11 }
  0x57   :  { %p4953_p0 = por %p4952_p13, %p4951_p12 }
  0x59   :  { %p4954_p1 = pnand %p4953_p0, %p4947_p11 }
  0x5b   :  { %4957 = shalt.err (!%p4954_p1)
}
  0x5c   :  { %126 = dma.hbm_to_vmem [thread:$0]  %s5380_s29, 16, %s5507_s28, [#allocation8]  }
  0x5d   :  { %s5319_s13 = smov [#allocation10]   ;;  %s5320_s18 = smov [#allocation13]  }
  0x5e   :  { %s145_s16 = sshll.u32 %s5319_s13, 4  ;;  %s168_s22 = sshll.u32 %s5320_s18, 4  ;;  %s146_s16 = int_to_ptr.vmem [resolvable:$true] %s145_s16  ;;  %s5526_s22 = int_to_ptr.vmem [resolvable:$true] %s168_s22 }
  0x5f   :  { %s4958_s23 = scalar_lea.hbm %s5395_s14, 16 }
  0x60   :  { %p4959_p2 = scmp.ne.s32.totalorder %s5395_s14, %s4958_s23  ;;  %p4962_p3 = scmp.lt.u32.totalorder %s4958_s23, %s5395_s14 }
  0x62   :  { %p4964_p4 = pnand %p4962_p3, %p4959_p2 }
  0x64   :  { %4967 = shalt.err (!%p4964_p4)
}
  0x65   :  { %s4968_s26 = scalar_lea.vmem %s146_s16, 16  ;;  %s4972_s0 = scalar_lea.vmem %s146_s16, 32 }
  0x66   :  { %p4969_p5 = scmp.ne.s32.totalorder %s146_s16, %s4968_s26  ;;  %p4973_p6 = scmp.lt.s32.totalorder %s146_s16, %s146_s16 }
  0x67   :  { %p4974_p7 = scmp.lt.s32.totalorder %s4972_s0, %s4968_s26 }
  0x69   :  { %p4975_p8 = por %p4974_p7, %p4973_p6 }
  0x6b   :  { %p4976_p9 = pnand %p4975_p8, %p4969_p5 }
  0x6d   :  { %4979 = shalt.err (!%p4976_p9)
}
  0x6e   :  { %148 = dma.hbm_to_vmem [thread:$0]  %s5395_s14, 16, %s146_s16, [#allocation11]  }
  0x6f   :  { %s4980_s29 = scalar_lea.hbm %s5415_s6, 512 }
  0x70   :  { %p4981_p10 = scmp.ne.s32.totalorder %s5415_s6, %s4980_s29  ;;  %p4984_p11 = scmp.lt.u32.totalorder %s4980_s29, %s5415_s6 }
  0x72   :  { %p4986_p12 = pnand %p4984_p11, %p4981_p10 }
  0x74   :  { %4989 = shalt.err (!%p4986_p12)
}
  0x75   :  { %s4990_s28 = scalar_lea.vmem %s5526_s22, 512  ;;  %p4995_p0 = scmp.lt.s32.totalorder %s5526_s22, %s5526_s22 }
  0x76   :  { %p4991_p13 = scmp.ne.s32.totalorder %s5526_s22, %s4990_s28  ;;  %p4996_p1 = scmp.lt.s32.totalorder %s4990_s28, %s4990_s28 }
  0x78   :  { %p4997_p2 = por %p4996_p1, %p4995_p0 }
  0x7a   :  { %p4998_p3 = pnand %p4997_p2, %p4991_p13 }
  0x7c   :  { %5001 = shalt.err (!%p4998_p3)
}
  0x7d   :  { %174 = dma.hbm_to_vmem [thread:$0]  %s5415_s6, 512, %s5526_s22, [#allocation14], %s5317_s2, %s5317_s2, %s5318_s7  }
  0x7e   :  { %s5321_s14 = smov [#allocation16]   ;;  %s5322_s10 = smov [#allocation19]  }
  0x7f   :  { %s193_s1 = sshll.u32 %s5321_s14, 4  ;;  %s215_s11 = sshll.u32 %s5322_s10, 4  ;;  %s194_s1 = int_to_ptr.vmem [resolvable:$true] %s193_s1  ;;  %s216_s11 = int_to_ptr.vmem [resolvable:$true] %s215_s11 }
  0x80   :  { %s5002_s15 = scalar_lea.hbm %s5430_s27, 16 }
  0x81   :  { %p5003_p4 = scmp.ne.s32.totalorder %s5430_s27, %s5002_s15  ;;  %p5006_p5 = scmp.lt.u32.totalorder %s5002_s15, %s5430_s27 }
  0x83   :  { %p5008_p6 = pnand %p5006_p5, %p5003_p4 }
  0x85   :  { %5011 = shalt.err (!%p5008_p6)
}
  0x86   :  { %s5012_s13 = scalar_lea.vmem %s194_s1, 16  ;;  %s5016_s16 = scalar_lea.vmem %s194_s1, 32 }
  0x87   :  { %p5013_p7 = scmp.ne.s32.totalorder %s194_s1, %s5012_s13  ;;  %p5017_p8 = scmp.lt.s32.totalorder %s194_s1, %s194_s1 }
  0x88   :  { %p5018_p9 = scmp.lt.s32.totalorder %s5016_s16, %s5012_s13 }
  0x8a   :  { %p5019_p10 = por %p5018_p9, %p5017_p8 }
  0x8c   :  { %p5020_p11 = pnand %p5019_p10, %p5013_p7 }
  0x8e   :  { %5023 = shalt.err (!%p5020_p11)
}
  0x8f   :  { %196 = dma.hbm_to_vmem [thread:$0]  %s5430_s27, 16, %s194_s1, [#allocation17]  }
  0x90   :  { %s5024_s6 = scalar_lea.hbm %s5440_s12, 16 }
  0x91   :  { %p5025_p12 = scmp.ne.s32.totalorder %s5440_s12, %s5024_s6  ;;  %p5028_p13 = scmp.lt.u32.totalorder %s5024_s6, %s5440_s12 }
  0x93   :  { %p5030_p0 = pnand %p5028_p13, %p5025_p12 }
  0x95   :  { %5033 = shalt.err (!%p5030_p0)
}
  0x96   :  { %s5034_s18 = scalar_lea.vmem %s216_s11, 16  ;;  %s5038_s22 = scalar_lea.vmem %s216_s11, 32 }
  0x97   :  { %p5035_p1 = scmp.ne.s32.totalorder %s216_s11, %s5034_s18  ;;  %p5039_p2 = scmp.lt.s32.totalorder %s216_s11, %s216_s11 }
  0x98   :  { %p5040_p3 = scmp.lt.s32.totalorder %s5038_s22, %s5034_s18 }
  0x9a   :  { %p5041_p4 = por %p5040_p3, %p5039_p2 }
  0x9c   :  { %p5042_p5 = pnand %p5041_p4, %p5035_p1 }
  0x9e   :  { %5045 = shalt.err (!%p5042_p5)
}
  0x9f   :  { %218 = dma.hbm_to_vmem [thread:$0]  %s5440_s12, 16, %s216_s11, [#allocation20]  }
  0xa0   :  { %s5323_s23 = smov [#allocation22]   ;;  %s5324_s26 = smov [#allocation2]  }
  0xa1   :  { %s237_s27 = sshll.u32 %s5323_s23, 4  ;;  %s84_s0 = sshll.u32 %s5324_s26, 4  ;;  %s238_s27 = int_to_ptr.vmem [resolvable:$true] %s237_s27  ;;  %s5552_s0 = int_to_ptr.vmem [resolvable:$true] %s84_s0 }
  0xa2   :  { %s5046_s29 = scalar_lea.hbm %s5450_s24, 16 }
  0xa3   :  { %p5047_p6 = scmp.ne.s32.totalorder %s5450_s24, %s5046_s29  ;;  %p5050_p7 = scmp.lt.u32.totalorder %s5046_s29, %s5450_s24 }
  0xa5   :  { %p5052_p8 = pnand %p5050_p7, %p5047_p6 }
  0xa7   :  { %5055 = shalt.err (!%p5052_p8)
}
  0xa8   :  { %s5056_s28 = scalar_lea.vmem %s238_s27, 16  ;;  %s5060_s14 = scalar_lea.vmem %s238_s27, 32 }
  0xa9   :  { %p5057_p9 = scmp.ne.s32.totalorder %s238_s27, %s5056_s28  ;;  %p5061_p10 = scmp.lt.s32.totalorder %s238_s27, %s238_s27 }
  0xaa   :  { %p5062_p11 = scmp.lt.s32.totalorder %s5060_s14, %s5056_s28 }
  0xac   :  { %p5063_p12 = por %p5062_p11, %p5061_p10 }
  0xae   :  { %p5064_p13 = pnand %p5063_p12, %p5057_p9 }
  0xb0   :  { %5067 = shalt.err (!%p5064_p13)
}
  0xb1   :  { %240 = dma.hbm_to_vmem [thread:$0]  %s5450_s24, 16, %s238_s27, [#allocation23]  }
  0xb2   :  { %s5068_s12 = scalar_lea.hbm %s5355_s9, 1024 }
  0xb3   :  { %p5069_p0 = scmp.ne.s32.totalorder %s5355_s9, %s5068_s12  ;;  %p5072_p1 = scmp.lt.u32.totalorder %s5068_s12, %s5355_s9 }
  0xb5   :  { %p5074_p2 = pnand %p5072_p1, %p5069_p0 }
  0xb7   :  { %5077 = shalt.err (!%p5074_p2)
}
  0xb8   :  { %s5078_s1 = scalar_lea.vmem %s5552_s0, 1024  ;;  %p5083_p4 = scmp.lt.s32.totalorder %s5552_s0, %s5552_s0 }
  0xb9   :  { %p5079_p3 = scmp.ne.s32.totalorder %s5552_s0, %s5078_s1  ;;  %p5084_p5 = scmp.lt.s32.totalorder %s5078_s1, %s5078_s1 }
  0xbb   :  { %p5085_p6 = por %p5084_p5, %p5083_p4 }
  0xbd   :  { %p5086_p7 = pnand %p5085_p6, %p5079_p3 }
  0xbf   :  { %5089 = shalt.err (!%p5086_p7)
}
  0xc0   :  { %90 = dma.hbm_to_vmem [thread:$0]  %s5355_s9, 1024, %s5552_s0, [#allocation3], %s5317_s2, %s5317_s2, %s5318_s7  }
  0xc1   :  { %s5325_s24 = smov [#allocation6]   ;;  %s5326_s11 = smov [#allocation9]  }
  0xc2   :  { %s109_s10 = sshll.u32 %s5325_s24, 4  ;;  %s135_s15 = sshll.u32 %s5326_s11, 4  ;;  %s110_s10 = int_to_ptr.vmem [resolvable:$true] %s109_s10  ;;  %s136_s15 = int_to_ptr.vmem [resolvable:$true] %s135_s15 }
  0xc3   :  { %s5090_s13 = scalar_lea.hbm %s5365_s17, 64 }
  0xc4   :  { %p5091_p8 = scmp.ne.s32.totalorder %s5365_s17, %s5090_s13  ;;  %p5094_p9 = scmp.lt.u32.totalorder %s5090_s13, %s5365_s17 }
  0xc6   :  { %p5096_p10 = pnand %p5094_p9, %p5091_p8 }
  0xc8   :  { %5099 = shalt.err (!%p5096_p10)
}
  0xc9   :  { %s5100_s16 = scalar_lea.vmem %s110_s10, 64  ;;  %p5105_p12 = scmp.lt.s32.totalorder %s110_s10, %s110_s10 }
  0xca   :  { %p5101_p11 = scmp.ne.s32.totalorder %s110_s10, %s5100_s16  ;;  %p5106_p13 = scmp.lt.s32.totalorder %s5100_s16, %s5100_s16 }
  0xcc   :  { %p5107_p0 = por %p5106_p13, %p5105_p12 }
  0xce   :  { %p5108_p1 = pnand %p5107_p0, %p5101_p11 }
  0xd0   :  { %5111 = shalt.err (!%p5108_p1)
}
  0xd1   :  { %112 = dma.hbm_to_vmem [thread:$0]  %s5365_s17, 64, %s110_s10, [#allocation5]  }
  0xd2   :  { %s5112_s9 = scalar_lea.hbm %s5390_s8, 16 }
  0xd3   :  { %p5113_p2 = scmp.ne.s32.totalorder %s5390_s8, %s5112_s9  ;;  %p5116_p3 = scmp.lt.u32.totalorder %s5112_s9, %s5390_s8 }
  0xd5   :  { %p5118_p4 = pnand %p5116_p3, %p5113_p2 }
  0xd7   :  { %5121 = shalt.err (!%p5118_p4)
}
  0xd8   :  { %s5122_s6 = scalar_lea.vmem %s136_s15, 16  ;;  %s5126_s18 = scalar_lea.vmem %s136_s15, 32 }
  0xd9   :  { %p5123_p5 = scmp.ne.s32.totalorder %s136_s15, %s5122_s6  ;;  %p5127_p6 = scmp.lt.s32.totalorder %s136_s15, %s136_s15 }
  0xda   :  { %p5128_p7 = scmp.lt.s32.totalorder %s5126_s18, %s5122_s6 }
  0xdc   :  { %p5129_p8 = por %p5128_p7, %p5127_p6 }
  0xde   :  { %p5130_p9 = pnand %p5129_p8, %p5123_p5 }
  0xe0   :  { %5133 = shalt.err (!%p5130_p9)
}
  0xe1   :  { %138 = dma.hbm_to_vmem [thread:$0]  %s5390_s8, 16, %s136_s15, [#allocation8]  }
  0xe2   :  { %s5327_s22 = smov [#allocation12]   ;;  %s5328_s23 = smov [#allocation15]  }
  0xe3   :  { %s155_s17 = sshll.u32 %s5327_s22, 4  ;;  %s183_s27 = sshll.u32 %s5328_s23, 4  ;;  %s156_s17 = int_to_ptr.vmem [resolvable:$true] %s155_s17  ;;  %s184_s27 = int_to_ptr.vmem [resolvable:$true] %s183_s27 }
  0xe4   :  { %s5134_s26 = scalar_lea.hbm %s5400_s19, 16 }
  0xe5   :  { %p5135_p10 = scmp.ne.s32.totalorder %s5400_s19, %s5134_s26  ;;  %p5138_p11 = scmp.lt.u32.totalorder %s5134_s26, %s5400_s19 }
  0xe7   :  { %p5140_p12 = pnand %p5138_p11, %p5135_p10 }
  0xe9   :  { %5143 = shalt.err (!%p5140_p12)
}
  0xea   :  { %s5144_s0 = scalar_lea.vmem %s156_s17, 16  ;;  %s5148_s29 = scalar_lea.vmem %s156_s17, 32 }
  0xeb   :  { %p5145_p13 = scmp.ne.s32.totalorder %s156_s17, %s5144_s0  ;;  %p5149_p0 = scmp.lt.s32.totalorder %s156_s17, %s156_s17 }
  0xec   :  { %p5150_p1 = scmp.lt.s32.totalorder %s5148_s29, %s5144_s0 }
  0xee   :  { %p5151_p2 = por %p5150_p1, %p5149_p0 }
  0xf0   :  { %p5152_p3 = pnand %p5151_p2, %p5145_p13 }
  0xf2   :  { %5155 = shalt.err (!%p5152_p3)
}
  0xf3   :  { %158 = dma.hbm_to_vmem [thread:$0]  %s5400_s19, 16, %s156_s17, [#allocation11]  }
  0xf4   :  { %s5156_s8 = scalar_lea.hbm %s5425_s20, 16 }
  0xf5   :  { %p5157_p4 = scmp.ne.s32.totalorder %s5425_s20, %s5156_s8  ;;  %p5160_p5 = scmp.lt.u32.totalorder %s5156_s8, %s5425_s20 }
  0xf7   :  { %p5162_p6 = pnand %p5160_p5, %p5157_p4 }
  0xf9   :  { %5165 = shalt.err (!%p5162_p6)
}
  0xfa   :  { %s5166_s28 = scalar_lea.vmem %s184_s27, 16  ;;  %s5170_s14 = scalar_lea.vmem %s184_s27, 32 }
  0xfb   :  { %p5167_p7 = scmp.ne.s32.totalorder %s184_s27, %s5166_s28  ;;  %p5171_p8 = scmp.lt.s32.totalorder %s184_s27, %s184_s27 }
  0xfc   :  { %p5172_p9 = scmp.lt.s32.totalorder %s5170_s14, %s5166_s28 }
  0xfe   :  { %p5173_p10 = por %p5172_p9, %p5171_p8 }
 0x100   :  { %p5174_p11 = pnand %p5173_p10, %p5167_p7 }
 0x102   :  { %5177 = shalt.err (!%p5174_p11)
}
 0x103   :  { %186 = dma.hbm_to_vmem [thread:$0]  %s5425_s20, 16, %s184_s27, [#allocation14]  }
 0x104   :  { %s5329_s12 = smov [#allocation18]   ;;  %s5330_s1 = smov [#allocation21]  }
 0x105   :  { %s202_s19 = sshll.u32 %s5329_s12, 4  ;;  %s224_s24 = sshll.u32 %s5330_s1, 4  ;;  %s203_s19 = int_to_ptr.vmem [resolvable:$true] %s202_s19  ;;  %s5586_s24 = int_to_ptr.vmem [resolvable:$true] %s224_s24 }
 0x106   :  { %s5178_s10 = scalar_lea.hbm %s5435_s4, 512 }
 0x107   :  { %p5179_p12 = scmp.ne.s32.totalorder %s5435_s4, %s5178_s10  ;;  %p5182_p13 = scmp.lt.u32.totalorder %s5178_s10, %s5435_s4 }
 0x109   :  { %p5184_p0 = pnand %p5182_p13, %p5179_p12 }
 0x10b   :  { %5187 = shalt.err (!%p5184_p0)
}
 0x10c   :  { %s5188_s11 = scalar_lea.vmem %s203_s19, 512  ;;  %p5193_p2 = scmp.lt.s32.totalorder %s203_s19, %s203_s19 }
 0x10d   :  { %p5189_p1 = scmp.ne.s32.totalorder %s203_s19, %s5188_s11  ;;  %p5194_p3 = scmp.lt.s32.totalorder %s5188_s11, %s5188_s11 }
 0x10f   :  { %p5195_p4 = por %p5194_p3, %p5193_p2 }
 0x111   :  { %p5196_p5 = pnand %p5195_p4, %p5189_p1 }
 0x113   :  { %5199 = shalt.err (!%p5196_p5)
}
 0x114   :  { %208 = dma.hbm_to_vmem [thread:$0]  %s5435_s4, 512, %s203_s19, [#allocation17], %s5317_s2, %s5317_s2, %s5318_s7  }
 0x115   :  { %s5200_s20 = scalar_lea.hbm %s5445_s30, 512 }
 0x116   :  { %p5201_p6 = scmp.ne.s32.totalorder %s5445_s30, %s5200_s20  ;;  %p5204_p7 = scmp.lt.u32.totalorder %s5200_s20, %s5445_s30 }
 0x118   :  { %p5206_p8 = pnand %p5204_p7, %p5201_p6 }
 0x11a   :  { %5209 = shalt.err (!%p5206_p8)
}
 0x11b   :  { %s5210_s15 = scalar_lea.vmem %s5586_s24, 512  ;;  %p5215_p10 = scmp.lt.s32.totalorder %s5586_s24, %s5586_s24 }
 0x11c   :  { %p5211_p9 = scmp.ne.s32.totalorder %s5586_s24, %s5210_s15  ;;  %p5216_p11 = scmp.lt.s32.totalorder %s5210_s15, %s5210_s15 }
 0x11e   :  { %p5217_p12 = por %p5216_p11, %p5215_p10 }
 0x120   :  { %p5218_p13 = pnand %p5217_p12, %p5211_p9 }
 0x122   :  { %5221 = shalt.err (!%p5218_p13)
}
 0x123   :  { %s6130_s4 = sld [smem:[#allocation43_spill]]  ;;  %s5331_s13 = smov [#allocation24]  }
 0x124   :  { %230 = dma.hbm_to_vmem [thread:$0]  %s5445_s30, 512, %s5586_s24, [#allocation20], %s5317_s2, %s5317_s2, %s5318_s7  }
 0x125   :  { %s247_s16 = sshll.u32 %s5331_s13, 4  ;;  %s5332_s9 = smov [#allocation25]   ;;  %s248_s16 = int_to_ptr.vmem [resolvable:$true] %s247_s16 }
 0x126   :  { %s262_s6 = sshll.u32 %s5332_s9, 4  ;;  %s5607_s6 = int_to_ptr.vmem [resolvable:$true] %s262_s6 }
 0x129   :  { %s5222_s18 = scalar_lea.hbm %s6130_s4, 16 }
 0x12a   :  { %p5223_p0 = scmp.ne.s32.totalorder %s6130_s4, %s5222_s18  ;;  %p5226_p1 = scmp.lt.u32.totalorder %s5222_s18, %s6130_s4 }
 0x12c   :  { %p5228_p2 = pnand %p5226_p1, %p5223_p0 }
 0x12e   :  { %5231 = shalt.err (!%p5228_p2)
}
 0x12f   :  { %s5232_s22 = scalar_lea.vmem %s248_s16, 16  ;;  %s5236_s17 = scalar_lea.vmem %s248_s16, 32 }
 0x130   :  { %p5233_p3 = scmp.ne.s32.totalorder %s248_s16, %s5232_s22  ;;  %p5237_p4 = scmp.lt.s32.totalorder %s248_s16, %s248_s16 }
 0x131   :  { %p5238_p5 = scmp.lt.s32.totalorder %s5236_s17, %s5232_s22 }
 0x133   :  { %p5239_p6 = por %p5238_p5, %p5237_p4 }
 0x135   :  { %p5240_p7 = pnand %p5239_p6, %p5233_p3 }
 0x137   :  { %5243 = shalt.err (!%p5240_p7)
}
 0x138   :  { %s6131_s30 = sld [smem:[#allocation47_spill]] }
 0x139   :  { %250 = dma.hbm_to_vmem [thread:$0]  %s6130_s4, 16, %s248_s16, [#allocation23]  }
 0x13e   :  { %s5244_s23 = scalar_lea.hbm %s6131_s30, 512 }
 0x13f   :  { %p5245_p8 = scmp.ne.s32.totalorder %s6131_s30, %s5244_s23  ;;  %p5248_p9 = scmp.lt.u32.totalorder %s5244_s23, %s6131_s30 }
 0x141   :  { %p5250_p10 = pnand %p5248_p9, %p5245_p8 }
 0x143   :  { %5253 = shalt.err (!%p5250_p10)
}
 0x144   :  { %s5254_s27 = scalar_lea.vmem %s5607_s6, 512  ;;  %p5259_p12 = scmp.lt.s32.totalorder %s5607_s6, %s5607_s6 }
 0x145   :  { %p5255_p11 = scmp.ne.s32.totalorder %s5607_s6, %s5254_s27  ;;  %p5260_p13 = scmp.lt.s32.totalorder %s5254_s27, %s5254_s27 }
 0x147   :  { %p5261_p0 = por %p5260_p13, %p5259_p12 }
 0x149   :  { %p5262_p1 = pnand %p5261_p0, %p5255_p11 }
 0x14b   :  { %5265 = shalt.err (!%p5262_p1)
}
 0x14c   :  { %268 = dma.hbm_to_vmem [thread:$0]  %s6131_s30, 512, %s5607_s6, [#allocation26], %s5317_s2, %s5317_s2, %s5318_s7  }
 0x14d   :  { %5266 = dma.done.wait [#allocation3], 1024  }
 0x14e   :  { %5267 = vsyncadd [#allocation3], 4294966272 }
 0x14f   :  { %5268 = dma.done.wait [#allocation5], 320  }
 0x150   :  { %5269 = vsyncadd [#allocation5], 4294966976 }
 0x151   :  { %5270 = dma.done.wait [#allocation8], 32  }
 0x152   :  { %5271 = vsyncadd [#allocation8], 4294967264 }
 0x153   :  { %5272 = dma.done.wait [#allocation11], 32  }
 0x154   :  { %5273 = vsyncadd [#allocation11], 4294967264 }
 0x155   :  { %5274 = dma.done.wait [#allocation14], 528  }
 0x156   :  { %5275 = vsyncadd [#allocation14], 4294966768 }
 0x157   :  { %5276 = dma.done.wait [#allocation17], 528  }
 0x158   :  { %5277 = vsyncadd [#allocation17], 4294966768 }
 0x159   :  { %5278 = dma.done.wait [#allocation20], 528  }
 0x15a   :  { %5279 = vsyncadd [#allocation20], 4294966768 }
 0x15b   :  { %5280 = dma.done.wait [#allocation23], 32  }
 0x15c   :  { %5281 = vsyncadd [#allocation23], 4294967264 }
 0x15d   :  { %5282 = dma.done.wait [#allocation26], 512  }
 0x15e   :  { %5283 = vsyncadd [#allocation26], 4294966784  ;;  %s6132_s26 = sld [smem:[#allocation36_spill]]  ;;  %s6133_s2 = sld [smem:[#allocation38_spill]]  ;;  %vm352_vm0 = vcmask 1043456   ;;  %vm345_vm1 = vcmask 31744  }
 0x15f   :  { %v337_v0 = vld [vmem:[#allocation6] sm:$0xf]  ;;  %s6134_s0 = sld [smem:[#allocation37_spill]]  ;;  %v433_v15 = vld [vmem:[#allocation4] sm:$0xff]  ;;  %v434_v16 = vld [vmem:[#allocation4 + $0x8] sm:$0xff]  ;;  %vm448_vm2 = vcmask 261120  }
 0x160   :  { %4440 = vmatprep.subr.msk.mxu0 %vm352_vm0, %v337_v0  ;;  %v4236_v20 = vld [vmem:[#allocation7] ss:$0 sm:$0xff]  ;;  %v5333_v22 = vmov 0.0   ;;  %s5334_s29 = smov 112   ;;  %s5335_s8 = smov 120   ;;  %vm5336_vm3 = vmmov 0  }
 0x161   :  { %4441 = vmatpush3.msk.msra.mxu0 %vm352_vm0, %v337_v0  ;;  %s5337_s28 = smov 104   ;;  %s5338_s14 = smov 96   ;;  %vm546_vm4 = vcmask 64512   ;;  %v5740_v41 = vld [vmem:[#allocation2] sm:$0xff]  ;;  %v5745_v46 = vld [vmem:[#allocation2 + $0x8] sm:$0xff]  ;;  %v5751_v53 = vld [vmem:[#allocation2 + $0x10] sm:$0xff] }
 0x162   :  { %4456 = vmatprep.subr.mxu0 %v5333_v22  ;;  %v5754_v59 = vld [vmem:[#allocation2 + $0x20] sm:$0xff]  ;;  %v5756_v60 = vld [vmem:[#allocation2 + $0x18] sm:$0xff]  ;;  %s5339_s12 = smov 64   ;;  %s6135_s19 = sld [smem:[#allocation39_spill]]  ;;  %vm1891_vm5 = vcmask 130048   ;;  %vm1894_vm6 = vcmask 195584  }
 0x163   :  { %s5340_s1 = smov 16   ;;  %s5341_s24 = smov 24  }
 0x164   :  { %v335_v1 = vld [vmem:[%s6132_s26] sm:$0xff]  ;;  %v336_v2 = vld [vmem:[%s6132_s26 + $0x8] sm:$0xff]  ;;  %v439_v6 = vld [vmem:[%s6133_s2 + $0x10] sm:$0xff]  ;;  %s6136_s10 = sld [smem:[#allocation40_spill]]  ;;  %s6137_s11 = sld [smem:[#allocation41_spill]] }
 0x165   :  { %4442 = vmatprep.mubr.msk.f32.mxu0 %vm345_vm1, %v335_v1  ;;  %v437_v3 = vld [vmem:[%s6133_s2] sm:$0xff]  ;;  %v438_v4 = vld [vmem:[%s6133_s2 + $0x8] sm:$0xff]  ;;  %v440_v7 = vld [vmem:[%s6133_s2 + $0x18] sm:$0xff]  ;;  %s6138_s20 = sld [smem:[#allocation42_spill]]  ;;  %s6140_s15 = sld [smem:[#allocation44_spill]] }
 0x166   :  { %4443 = vmatmul.mubr.msk.f32.vlgmr.msra.gmra.mrb[0].mxu0 %vm345_vm1, %v336_v2  ;;  %v4704_v5 = vpack.c.bf16 %v438_v4, %v437_v3  ;;  %v4708_v8 = vpack.c.bf16 %v440_v7, %v439_v6  ;;  %v4232_v9 = vld [vmem:[%s6134_s0] ss:$0 sm:$0xff]  ;;  %v5761_v6 = vld [vmem:[#allocation2 + $0x30] sm:$0xff]  ;;  %v5763_v7 = vld [vmem:[#allocation2 + $0x28] sm:$0xff]  ;;  %s6141_s4 = sld [smem:[#allocation46_spill]]  ;;  %s6142_s13 = sld [smem:[#allocation48_spill]] }
 0x167   :  { %4458 = vmatprep.mubr.msk.f32.mxu0 %vm5336_vm3, %v5333_v22  ;;  %s6143_s16 = sld [smem:[#allocation49_spill]] }
 0x168   :  { %4705 = vmatprep.subr.bf16.mxu1 %v4704_v5 }
 0x169   :  { %4707 = vmatpush3.bf16.msra.mxu1 %v4704_v5 }
 0x16a   :  { %4709 = vmatprep.subr.bf16.mxu1 %v4708_v8 }
 0x16d   :  { %4711 = vmatpush3.bf16.msra.mxu1 %v4708_v8 }
 0x16e   :  { %4466 = vmatprep.subr.mxu1 %v5333_v22 }
 0x239   :  { %v4444_v10 = vpop.f32.mrb[0].mxu0 }
 0x23a   :  { %v428_v11 = vadd.f32 %v4444_v10, %v4232_v9  ;;  %v422_v12 = vpop.f32.mrb[1].mxu0 }
 0x23b   :  { %v423_v13 = vadd.f32 %v4232_v9, %v422_v12 }
 0x23c   :  { %v432_v14 = vmul.f32 5.656854, %v428_v11 }
 0x23d   :  { %v431_v17 = vmul.f32 5.656854, %v423_v13 }
 0x23e   :  { %v5636_v19 = vadd.f32 %v434_v16, %v432_v14 }
 0x23f   :  { %v5634_v18 = vadd.f32 %v433_v15, %v431_v17  ;;  %v5769_v17 = vld [vmem:[#allocation2 + $0x38] sm:$0xff] }
 0x241   :  { %4453 = vmatprep.mubr.msk.f32.mxu1 %vm448_vm2, %v5634_v18 }
 0x242   :  { %4454 = vmatmul.mubr.msk.f32.vlgmr.msra.gmra.mrb[0].mxu1 %vm448_vm2, %v5636_v19 }
 0x243   :  { %4468 = vmatprep.mubr.msk.f32.mxu1 %vm5336_vm3, %v5333_v22 }
 0x315   :  { %v4455_v21 = vpop.f32.mrb[0].mxu1 }
 0x316   :  { %v521_v23 = vpop.f32.mrb[1].mxu1  ;;  %v5654_v25 = vadd.f32 %v4455_v21, %v4236_v20 }
 0x317   :  { %v5644_v24 = vadd.f32 %v4236_v20, %v521_v23 }
 0x319   :  { %536 = vrot.lane.b32.xlu1 %v5644_v24, %s5334_s29  ;;  %532 = vrot.lane.b32.xlu0 %v5644_v24, %s5335_s8 }
 0x31d   :  { %538 = vrot.lane.b32.xlu1 %v5654_v25, %s5334_s29  ;;  %534 = vrot.lane.b32.xlu0 %v5654_v25, %s5335_s8 }
 0x321   :  { %542 = vrot.lane.b32.xlu1 %v5654_v25, %s5337_s28  ;;  %540 = vrot.lane.b32.xlu0 %v5644_v24, %s5337_s28 }
 0x325   :  { %621 = vrot.lane.b32.xlu1 %v5654_v25, %s5338_s14  ;;  %544 = vrot.lane.b32.xlu0 %v5644_v24, %s5338_s14 }
 0x38b   :  { %v5668_v26 = vpop.permute.xlu1 %536  ;;  %v5670_v27 = vpop.permute.xlu0 %532 }
 0x38c   :  { %697 = vrot.lane.b32.xlu0 %v5670_v27, %s5338_s14 }
 0x38f   :  { %v5674_v28 = vpop.permute.xlu1 %538  ;;  %v5676_v29 = vpop.permute.xlu0 %534 }
 0x390   :  { %849 = vrot.lane.b32.xlu0 %v5668_v26, %s5338_s14  ;;  %773 = vrot.lane.b32.xlu1 %v5676_v29, %s5338_s14 }
 0x393   :  { %v5682_v30 = vpop.permute.xlu0 %540  ;;  %v5688_v31 = vpop.permute.xlu1 %542 }
 0x394   :  { %925 = vrot.lane.b32.xlu1 %v5674_v28, %s5338_s14  ;;  %1001 = vrot.lane.b32.xlu0 %v5682_v30, %s5338_s14 }
 0x397   :  { %v545_v32 = vpop.permute.xlu0 %544  ;;  %v622_v33 = vpop.permute.xlu1 %621 }
 0x398   :  { %1077 = vrot.lane.b32.xlu1 %v5688_v31, %s5338_s14  ;;  %4457 = vmatpush3.xpose.msk.msra.mxu0 %vm546_vm4, %v545_v32 }
 0x399   :  { %4461 = vmatprep.subr.mxu0 %v5333_v22 }
 0x39b   :  { %4459 = vmatmul.mubr.msk.f32.vlgmr.msra.gmra.mrb[2].mxu0 %vm546_vm4, %v5644_v24 }
 0x39c   :  { %4462 = vmatpush3.xpose.msk.msra.mxu0 %vm546_vm4, %v622_v33  ;;  %4463 = vmatprep.mubr.msk.f32.mxu0 %vm5336_vm3, %v5333_v22 }
 0x39d   :  { %4471 = vmatprep.subr.mxu0 %v5333_v22 }
 0x39f   :  { %4464 = vmatmul.mubr.msk.f32.vlgmr.msra.gmra.mrb[4].mxu0 %vm546_vm4, %v5654_v25 }
 0x3a0   :  { %4473 = vmatprep.mubr.msk.f32.mxu0 %vm5336_vm3, %v5333_v22 }
 0x3fe   :  { %v698_v34 = vpop.permute.xlu0 %697 }
 0x3ff   :  { %4467 = vmatpush3.xpose.msk.msra.mxu1 %vm546_vm4, %v698_v34 }
 0x400   :  { %4476 = vmatprep.subr.mxu1 %v5333_v22 }
 0x402   :  { %v774_v35 = vpop.permute.xlu1 %773  ;;  %4469 = vmatmul.mubr.msk.f32.vlgmr.msra.gmra.mrb[2].mxu1 %vm546_vm4, %v5670_v27  ;;  %v850_v36 = vpop.permute.xlu0 %849 }
 0x403   :  { %4472 = vmatpush3.xpose.msk.msra.mxu0 %vm546_vm4, %v774_v35  ;;  %4477 = vmatpush3.xpose.msk.msra.mxu1 %vm546_vm4, %v850_v36 }
 0x404   :  { %4478 = vmatprep.mubr.msk.f32.mxu1 %vm5336_vm3, %v5333_v22  ;;  %4481 = vmatprep.subr.mxu0 %v5333_v22 }
 0x405   :  { %4486 = vmatprep.subr.mxu1 %v5333_v22 }
 0x406   :  { %v926_v37 = vpop.permute.xlu1 %925  ;;  %4474 = vmatmul.mubr.msk.f32.vlgmr.msra.gmra.mrb[6].mxu0 %vm546_vm4, %v5676_v29  ;;  %4479 = vmatmul.mubr.msk.f32.vlgmr.msra.gmra.mrb[4].mxu1 %vm546_vm4, %v5668_v26  ;;  %v1002_v38 = vpop.permute.xlu0 %1001 }
 0x407   :  { %4482 = vmatpush3.xpose.msk.msra.mxu0 %vm546_vm4, %v926_v37  ;;  %4487 = vmatpush3.xpose.msk.msra.mxu1 %vm546_vm4, %v1002_v38 }
 0x408   :  { %4483 = vmatprep.mubr.msk.f32.mxu0 %vm5336_vm3, %v5333_v22  ;;  %4488 = vmatprep.mubr.msk.f32.mxu1 %vm5336_vm3, %v5333_v22 }
 0x409   :  { %4491 = vmatprep.subr.mxu0 %v5333_v22  ;;  %4496 = vmatprep.subr.mxu1 %v5333_v22 }
 0x40a   :  { %v1078_v39 = vpop.permute.xlu1 %1077  ;;  %4484 = vmatmul.mubr.msk.f32.vlgmr.msra.gmra.mrb[8].mxu0 %vm546_vm4, %v5674_v28  ;;  %4489 = vmatmul.mubr.msk.f32.vlgmr.msra.gmra.mrb[6].mxu1 %vm546_vm4, %v5682_v30 }
 0x40b   :  { %4492 = vmatpush3.xpose.msk.msra.mxu0 %vm546_vm4, %v1078_v39  ;;  %4493 = vmatprep.mubr.msk.f32.mxu0 %vm5336_vm3, %v5333_v22 }
 0x40c   :  { %4501 = vmatprep.subr.mxu0 %v5333_v22  ;;  %4498 = vmatprep.mubr.msk.f32.mxu1 %vm5336_vm3, %v5333_v22 }
 0x40e   :  { %4494 = vmatmul.mubr.msk.f32.vlgmr.msra.gmra.mrb[10].mxu0 %vm546_vm4, %v5688_v31 }
 0x40f   :  { %4503 = vmatprep.mubr.msk.f32.mxu0 %vm5336_vm3, %v5333_v22 }
 0x46e   :  { %v617_v40 = vpop.f32.mrb[2].mxu0 }
 0x46f   :  { %v1153_v42 = vmul.f32 0.35355338, %v617_v40  ;;  %v4460_v43 = vpop.f32.mrb[3].mxu0 }
 0x471   :  { %v5743_v44 = vadd.f32 %v1153_v42, %v5740_v41 }
 0x472   :  { %v693_v45 = vpop.f32.mrb[4].mxu0 }
 0x473   :  { %v1154_v47 = vmul.f32 0.35355338, %v693_v45  ;;  %v4465_v48 = vpop.f32.mrb[5].mxu0  ;;  %v1169_v49 = vsel %vm546_vm4, %v5743_v44, -inf }
 0x474   :  { %1170 = vmax.xlane.f32.xlu0 %v1169_v49 }
 0x475   :  { %v1162_v50 = vadd.f32 %v1154_v47, %v5745_v46 }
 0x477   :  { %v1172_v51 = vsel %vm546_vm4, %v1162_v50, -inf }
 0x478   :  { %1173 = vmax.xlane.f32.xlu1 %v1172_v51 }
 0x4d5   :  { %v769_v52 = vpop.f32.mrb[2].mxu1 }
 0x4d6   :  { %v1155_v54 = vmul.f32 0.35355338, %v769_v52  ;;  %v4470_v55 = vpop.f32.mrb[3].mxu1 }
 0x4d8   :  { %v1163_v56 = vadd.f32 %v1155_v54, %v5751_v53 }
 0x4d9   :  { %v845_v57 = vpop.f32.mrb[6].mxu0  ;;  %v921_v58 = vpop.f32.mrb[4].mxu1 }
 0x4da   :  { %v1156_v61 = vmul.f32 0.35355338, %v845_v57  ;;  %v1157_v62 = vmul.f32 0.35355338, %v921_v58  ;;  %v4475_v63 = vpop.f32.mrb[7].mxu0  ;;  %v4480_v0 = vpop.f32.mrb[5].mxu1 }
 0x4db   :  { %v1175_v1 = vsel %vm546_vm4, %v1163_v56, -inf }
 0x4dc   :  { %1176 = vmax.xlane.f32.xlu0 %v1175_v1  ;;  %v1165_v2 = vadd.f32 %v1157_v62, %v5754_v59  ;;  %v1164_v3 = vadd.f32 %v1156_v61, %v5756_v60 }
 0x4dd   :  { %v997_v4 = vpop.f32.mrb[8].mxu0  ;;  %v1073_v5 = vpop.f32.mrb[6].mxu1 }
 0x4de   :  { %v1158_v8 = vmul.f32 0.35355338, %v997_v4  ;;  %v1159_v9 = vmul.f32 0.35355338, %v1073_v5  ;;  %v4485_v10 = vpop.f32.mrb[9].mxu0  ;;  %v4490_v11 = vpop.f32.mrb[7].mxu1 }
 0x4df   :  { %v1181_v12 = vsel %vm546_vm4, %v1165_v2, -inf  ;;  %v1178_v13 = vsel %vm546_vm4, %v1164_v3, -inf }
 0x4e0   :  { %1182 = vmax.xlane.f32.xlu1 %v1181_v12  ;;  %1179 = vmax.xlane.f32.xlu0 %v1178_v13  ;;  %v1167_v14 = vadd.f32 %v1159_v9, %v5761_v6  ;;  %v1166_v15 = vadd.f32 %v1158_v8, %v5763_v7 }
 0x4e1   :  { %v1149_v16 = vpop.f32.mrb[10].mxu0 }
 0x4e2   :  { %v1160_v20 = vmul.f32 0.35355338, %v1149_v16  ;;  %v4495_v21 = vpop.f32.mrb[11].mxu0  ;;  %v1187_v23 = vsel %vm546_vm4, %v1167_v14, -inf  ;;  %v1184_v32 = vsel %vm546_vm4, %v1166_v15, -inf }
 0x4e4   :  { %1188 = vmax.xlane.f32.xlu1 %v1187_v23  ;;  %1185 = vmax.xlane.f32.xlu0 %v1184_v32  ;;  %v1168_v33 = vadd.f32 %v1160_v20, %v5769_v17 }
 0x4e6   :  { %v1190_v34 = vsel %vm546_vm4, %v1168_v33, -inf }
 0x4e8   :  { %1191 = vmax.xlane.f32.xlu0 %v1190_v34 }
 0x4f5   :  { %1257 = vrot.lane.b32.xlu1 %v5644_v24, %s5339_s12 }
 0x4f9   :  { %1409 = vrot.lane.b32.xlu1 %v5670_v27, %s5339_s12 }
 0x4fd   :  { %1485 = vrot.lane.b32.xlu1 %v5676_v29, %s5339_s12 }
 0x4fe   :  { %1333 = vrot.lane.b32.xlu0 %v5654_v25, %s5339_s12 }
 0x501   :  { %1637 = vrot.lane.b32.xlu1 %v5674_v28, %s5339_s12  ;;  %v1171_v37 = vpop.xlane.xlu0 %1170 }
 0x502   :  { %1561 = vrot.lane.b32.xlu0 %v5668_v26, %s5339_s12  ;;  %v1193_v24 = vsub.f32 %v5743_v44, %v1171_v37 }
 0x504   :  { %v1201_v39 = vmul.f32 1.442695, %v1193_v24 }
 0x505   :  { %v1174_v35 = vpop.xlane.xlu1 %1173 }
 0x506   :  { %v1194_v36 = vsub.f32 %v1162_v50, %v1174_v35 }
 0x508   :  { %v1203_v38 = vmul.f32 1.442695, %v1194_v36 }
 0x50a   :  { %4834 = vpow2.f32 %v1203_v38 }
 0x50b   :  { %4836 = vpow2.f32 %v1201_v39 }
 0x514   :  { %v5788_v27 = vpop.eup %4834 }
 0x515   :  { %v1220_v25 = vsel %vm546_vm4, %v5788_v27, 0.0  ;;  %v5792_v29 = vpop.eup %4836 }
 0x516   :  { %v1217_v26 = vsel %vm546_vm4, %v5792_v29, 0.0 }
 0x521   :  { %1221 = vadd.xlane.f32.xlu0 %v1220_v25 }
 0x525   :  { %1218 = vadd.xlane.f32.xlu1 %v1217_v26 }
 0x569   :  { %v1177_v28 = vpop.xlane.xlu0 %1176 }
 0x56a   :  { %v1195_v40 = vsub.f32 %v1163_v56, %v1177_v28 }
 0x56c   :  { %v1205_v42 = vmul.f32 1.442695, %v1195_v40 }
 0x56d   :  { %v1183_v43 = vpop.xlane.xlu1 %1182  ;;  %v1180_v44 = vpop.xlane.xlu0 %1179 }
 0x56e   :  { %4838 = vpow2.f32 %v1205_v42  ;;  %v1197_v45 = vsub.f32 %v1165_v2, %v1183_v43  ;;  %v1196_v47 = vsub.f32 %v1164_v3, %v1180_v44 }
 0x570   :  { %v1209_v48 = vmul.f32 1.442695, %v1197_v45  ;;  %v1207_v49 = vmul.f32 1.442695, %v1196_v47 }
 0x571   :  { %v1189_v50 = vpop.xlane.xlu1 %1188  ;;  %v1186_v51 = vpop.xlane.xlu0 %1185 }
 0x572   :  { %4840 = vpow2.f32 %v1209_v48  ;;  %v1199_v52 = vsub.f32 %v1167_v14, %v1189_v50  ;;  %v1198_v54 = vsub.f32 %v1166_v15, %v1186_v51 }
 0x573   :  { %4842 = vpow2.f32 %v1207_v49 }
 0x574   :  { %v1213_v55 = vmul.f32 1.442695, %v1199_v52  ;;  %v1211_v57 = vmul.f32 1.442695, %v1198_v54 }
 0x575   :  { %v1258_v58 = vpop.permute.xlu1 %1257  ;;  %v1192_v61 = vpop.xlane.xlu0 %1191 }
 0x576   :  { %4844 = vpow2.f32 %v1213_v55  ;;  %v1200_v56 = vsub.f32 %v1168_v33, %v1192_v61  ;;  %4497 = vmatpush3.msra.mxu1 %v1258_v58  ;;  %v1897_v55 = vld [vmem:[%s6135_s19] sm:$0xff]  ;;  %v1899_v61 = vld [vmem:[%s6135_s19 + $0x10] sm:$0xff] }
 0x577   :  { %4846 = vpow2.f32 %v1211_v57  ;;  %4506 = vmatprep.subr.mxu1 %v5333_v22  ;;  %v1898_v57 = vld [vmem:[%s6135_s19 + $0x8] sm:$0xff] }
 0x578   :  { %v4839_v62 = vpop.eup %4838  ;;  %v1215_v63 = vmul.f32 1.442695, %v1200_v56  ;;  %v4712_v58 = vpack.c.bf16 %v1898_v57, %v1897_v55  ;;  %v1900_v56 = vld [vmem:[%s6135_s19 + $0x18] sm:$0xff]  ;;  %v2131_v57 = vld [vmem:[#allocation13 + $0x8] sm:$0xff] }
 0x579   :  { %v1334_v0 = vpop.permute.xlu0 %1333  ;;  %v1223_v1 = vsel %vm546_vm4, %v4839_v62, 0.0  ;;  %v1410_v14 = vpop.permute.xlu1 %1409  ;;  %v2130_v55 = vld [vmem:[#allocation13] sm:$0xff] }
 0x57a   :  { %4848 = vpow2.f32 %v1215_v63  ;;  %1224 = vadd.xlane.f32.xlu1 %v1223_v1  ;;  %4502 = vmatpush3.msra.mxu0 %v1334_v0 }
 0x57b   :  { %4511 = vmatprep.subr.mxu0 %v5333_v22 }
 0x57c   :  { %v4841_v2 = vpop.eup %4840 }
 0x57d   :  { %v4843_v3 = vpop.eup %4842  ;;  %v1229_v4 = vsel %vm546_vm4, %v4841_v2, 0.0  ;;  %v1486_v15 = vpop.permute.xlu1 %1485 }
 0x57e   :  { %1230 = vadd.xlane.f32.xlu1 %v1229_v4  ;;  %v1226_v5 = vsel %vm546_vm4, %v4843_v3, 0.0  ;;  %v1562_v16 = vpop.permute.xlu0 %1561 }
 0x57f   :  { %1227 = vadd.xlane.f32.xlu0 %v1226_v5 }
 0x580   :  { %v4845_v8 = vpop.eup %4844 }
 0x581   :  { %v4847_v9 = vpop.eup %4846  ;;  %v1235_v10 = vsel %vm546_vm4, %v4845_v8, 0.0  ;;  %v1638_v20 = vpop.permute.xlu1 %1637 }
 0x582   :  { %1236 = vadd.xlane.f32.xlu1 %v1235_v10  ;;  %v1232_v11 = vsel %vm546_vm4, %v4847_v9, 0.0 }
 0x583   :  { %1233 = vadd.xlane.f32.xlu0 %v1232_v11 }
 0x584   :  { %v5803_v12 = vpop.eup %4848 }
 0x585   :  { %v1238_v13 = vsel %vm546_vm4, %v5803_v12, 0.0 }
 0x587   :  { %1239 = vadd.xlane.f32.xlu0 %v1238_v13 }
 0x593   :  { %1789 = vrot.lane.b32.xlu1 %v5688_v31, %s5339_s12 }
 0x59d   :  { %1713 = vrot.lane.b32.xlu0 %v5682_v30, %s5339_s12 }
 0x5ae   :  { %v1222_v21 = vpop.xlane.xlu0 %1221 }
 0x5af   :  { %4850 = vrcp.f32 %v1222_v21 }
 0x5b2   :  { %v1219_v23 = vpop.xlane.xlu1 %1218 }
 0x5b3   :  { %4852 = vrcp.f32 %v1219_v23 }
 0x5b9   :  { %v4851_v32 = vpop.eup %4850 }
 0x5ba   :  { %v1244_v33 = vmul.f32 %v4851_v32, %v5788_v27 }
 0x5bc   :  { %4504 = vmatmul.mubr.msk.f32.vlgmr.msra.gmra.mrb[12].mxu0 %vm546_vm4, %v1244_v33 }
 0x5bd   :  { %v4853_v34 = vpop.eup %4852  ;;  %4512 = vmatpush3.msra.mxu0 %v1486_v15  ;;  %4513 = vmatprep.mubr.msk.f32.mxu0 %vm5336_vm3, %v5333_v22 }
 0x5be   :  { %v1242_v30 = vmul.f32 %v4853_v34, %v5792_v29  ;;  %4521 = vmatprep.subr.mxu0 %v5333_v22 }
 0x5c0   :  { %4499 = vmatmul.mubr.msk.f32.vlgmr.msra.gmra.mrb[8].mxu1 %vm546_vm4, %v1242_v30 }
 0x5c1   :  { %4507 = vmatpush3.msra.mxu1 %v1410_v14  ;;  %4508 = vmatprep.mubr.msk.f32.mxu1 %vm5336_vm3, %v5333_v22 }
 0x5c2   :  { %4516 = vmatprep.subr.mxu1 %v5333_v22 }
 0x607   :  { %v1225_v31 = vpop.xlane.xlu1 %1224 }
 0x608   :  { %4854 = vrcp.f32 %v1225_v31 }
 0x60b   :  { %v1231_v35 = vpop.xlane.xlu1 %1230 }
 0x60c   :  { %4856 = vrcp.f32 %v1231_v35  ;;  %v1228_v36 = vpop.xlane.xlu0 %1227  ;;  %v4263_v35 = vld [vmem:[#allocation9] ss:$0 sm:$0xff] }
 0x60d   :  { %4858 = vrcp.f32 %v1228_v36 }
 0x60f   :  { %v1237_v37 = vpop.xlane.xlu1 %1236 }
 0x610   :  { %4860 = vrcp.f32 %v1237_v37  ;;  %v1234_v24 = vpop.xlane.xlu0 %1233 }
 0x611   :  { %4862 = vrcp.f32 %v1234_v24 }
 0x612   :  { %v4855_v38 = vpop.eup %4854 }
 0x613   :  { %v1246_v39 = vmul.f32 %v4855_v38, %v4839_v62  ;;  %v1790_v47 = vpop.permute.xlu1 %1789  ;;  %v4716_v62 = vpack.c.bf16 %v1900_v56, %v1899_v61 }
 0x614   :  { %v1240_v27 = vpop.xlane.xlu0 %1239 }
 0x615   :  { %4864 = vrcp.f32 %v1240_v27  ;;  %4509 = vmatmul.mubr.msk.f32.vlgmr.msra.gmra.mrb[10].mxu1 %vm546_vm4, %v1246_v39 }
 0x616   :  { %v4857_v25 = vpop.eup %4856  ;;  %4517 = vmatpush3.msra.mxu1 %v1562_v16  ;;  %4518 = vmatprep.mubr.msk.f32.mxu1 %vm5336_vm3, %v5333_v22 }
 0x617   :  { %v4859_v29 = vpop.eup %4858  ;;  %v1250_v26 = vmul.f32 %v4857_v25, %v4841_v2  ;;  %4526 = vmatprep.subr.mxu1 %v5333_v22 }
 0x618   :  { %v1248_v28 = vmul.f32 %v4859_v29, %v4843_v3  ;;  %v1714_v40 = vpop.permute.xlu0 %1713 }
 0x619   :  { %4519 = vmatmul.mubr.msk.f32.vlgmr.msra.gmra.mrb[12].mxu1 %vm546_vm4, %v1250_v26 }
 0x61a   :  { %v4861_v42 = vpop.eup %4860  ;;  %4514 = vmatmul.mubr.msk.f32.vlgmr.msra.gmra.mrb[14].mxu0 %vm546_vm4, %v1248_v28  ;;  %4527 = vmatpush3.msra.mxu1 %v1714_v40 }
 0x61b   :  { %v4863_v43 = vpop.eup %4862  ;;  %v1254_v44 = vmul.f32 %v4861_v42, %v4845_v8  ;;  %4522 = vmatpush3.msra.mxu0 %v1638_v20  ;;  %4523 = vmatprep.mubr.msk.f32.mxu0 %vm5336_vm3, %v5333_v22 }
 0x61c   :  { %v1252_v45 = vmul.f32 %v4863_v43, %v4847_v9  ;;  %4528 = vmatprep.mubr.msk.f32.mxu1 %vm5336_vm3, %v5333_v22  ;;  %4531 = vmatprep.subr.mxu0 %v5333_v22 }
 0x61d   :  { %4529 = vmatmul.mubr.msk.f32.vlgmr.msra.gmra.mrb[14].mxu1 %vm546_vm4, %v1254_v44  ;;  %4713 = vmatprep.subr.bf16.mxu1 %v4712_v58 }
 0x61e   :  { %4524 = vmatmul.mubr.msk.f32.vlgmr.msra.gmra.mrb[16].mxu0 %vm546_vm4, %v1252_v45  ;;  %4715 = vmatpush3.bf16.msra.mxu1 %v4712_v58  ;;  %v4728_v58 = vpack.c.bf16 %v2131_v57, %v2130_v55 }
 0x61f   :  { %v4865_v48 = vpop.eup %4864  ;;  %4532 = vmatpush3.msra.mxu0 %v1790_v47  ;;  %4533 = vmatprep.mubr.msk.f32.mxu0 %vm5336_vm3, %v5333_v22 }
 0x620   :  { %v1256_v49 = vmul.f32 %v4865_v48, %v5803_v12  ;;  %4717 = vmatprep.subr.bf16.mxu1 %v4716_v62  ;;  %v2036_v48 = vld [vmem:[%s6136_s10] sm:$0xff] }
 0x622   :  { %4534 = vmatmul.mubr.msk.f32.vlgmr.msra.gmra.mrb[18].mxu0 %vm546_vm4, %v1256_v49  ;;  %4719 = vmatpush3.bf16.msra.mxu1 %v4716_v62  ;;  %v2037_v49 = vld [vmem:[%s6136_s10 + $0x8] sm:$0xff] }
 0x623   :  { %4729 = vmatprep.subr.bf16.mxu1 %v4728_v58 }
 0x68f   :  { %v1405_v50 = vpop.f32.mrb[12].mxu0 }
 0x690   :  { %v4505_v51 = vpop.f32.mrb[13].mxu0 }
 0x691   :  { %v2038_v51 = vld [vmem:[%s6136_s10 + $0x10] sm:$0xff] }
 0x693   :  { %v1329_v52 = vpop.f32.mrb[8].mxu1 }
 0x694   :  { %v4500_v54 = vpop.f32.mrb[9].mxu1 }
 0x6e8   :  { %v1481_v63 = vpop.f32.mrb[10].mxu1 }
 0x6e9   :  { %v4510_v0 = vpop.f32.mrb[11].mxu1  ;;  %1867 = vrot.lane.b32.xlu0 %v1481_v63, %s5318_s7 }
 0x6ec   :  { %v1633_v1 = vpop.f32.mrb[12].mxu1 }
 0x6ed   :  { %v1557_v2 = vpop.f32.mrb[14].mxu0  ;;  %1875 = vrot.lane.b32.xlu0 %v1633_v1, %s5340_s1  ;;  %v4520_v3 = vpop.f32.mrb[13].mxu1 }
 0x6ee   :  { %1869 = vrot.lane.b32.xlu1 %v1557_v2, %s5318_s7  ;;  %v4515_v4 = vpop.f32.mrb[15].mxu0  ;;  %v4266_v3 = vld [vmem:[#allocation10] ss:$0 sm:$0xff] }
 0x6f0   :  { %v1785_v5 = vpop.f32.mrb[14].mxu1 }
 0x6f1   :  { %v1709_v8 = vpop.f32.mrb[16].mxu0  ;;  %1883 = vrot.lane.b32.xlu0 %v1785_v5, %s5341_s24  ;;  %v4530_v9 = vpop.f32.mrb[15].mxu1  ;;  %v4267_v5 = vld [vmem:[#allocation12] ss:$0 sm:$0xff] }
 0x6f2   :  { %1877 = vrot.lane.b32.xlu1 %v1709_v8, %s5340_s1  ;;  %v4525_v10 = vpop.f32.mrb[17].mxu0 }
 0x6f5   :  { %v1861_v11 = vpop.f32.mrb[18].mxu0 }
 0x6f6   :  { %1885 = vrot.lane.b32.xlu1 %v1861_v11, %s5341_s24  ;;  %v4535_v12 = vpop.f32.mrb[19].mxu0 }
 0x75b   :  { %v1868_v13 = vpop.permute.xlu0 %1867 }
 0x75c   :  { %v1889_v16 = vsel %vm546_vm4, %v1329_v52, %v1868_v13  ;;  %v2039_v52 = vld [vmem:[%s6136_s10 + $0x18] sm:$0xff] }
 0x75d   :  { %v4724_v54 = vpack.c.bf16 %v2039_v52, %v2038_v51  ;;  %v2271_v51 = vld [vmem:[#allocation18 + $0x18] sm:$0xff] }
 0x75f   :  { %v1876_v14 = vpop.permute.xlu0 %1875 }
 0x760   :  { %v1870_v15 = vpop.permute.xlu1 %1869  ;;  %v1892_v20 = vsel %vm1891_vm5, %v1889_v16, %v1876_v14  ;;  %v2132_v14 = vld [vmem:[#allocation13 + $0x10] sm:$0xff] }
 0x761   :  { %v1890_v33 = vsel %vm546_vm4, %v1405_v50, %v1870_v15  ;;  %v4720_v50 = vpack.c.bf16 %v2037_v49, %v2036_v48  ;;  %v2133_v15 = vld [vmem:[#allocation13 + $0x18] sm:$0xff]  ;;  %v2269_v48 = vld [vmem:[#allocation18 + $0x8] sm:$0xff] }
 0x762   :  { %v4732_v16 = vpack.c.bf16 %v2133_v15, %v2132_v14 }
 0x763   :  { %v1884_v21 = vpop.permute.xlu0 %1883  ;;  %4721 = vmatprep.subr.bf16.mxu0 %v4720_v50 }
 0x764   :  { %v1878_v23 = vpop.permute.xlu1 %1877  ;;  %v1895_v32 = vsel %vm1894_vm6, %v1892_v20, %v1884_v21  ;;  %4723 = vmatpush3.bf16.msra.mxu0 %v4720_v50  ;;  %v4268_v20 = vld [vmem:[%s6137_s11] ss:$0 sm:$0xff]  ;;  %v2270_v50 = vld [vmem:[#allocation18 + $0x10] sm:$0xff] }
 0x765   :  { %4544 = vmatprep.mubr.msk.f32.mxu1 %vm448_vm2, %v1895_v32  ;;  %v1893_v34 = vsel %vm1891_vm5, %v1890_v33, %v1878_v23  ;;  %4725 = vmatprep.subr.bf16.mxu0 %v4724_v54  ;;  %v4740_v52 = vpack.c.bf16 %v2271_v51, %v2270_v50 }
 0x768   :  { %v1886_v30 = vpop.permute.xlu1 %1885  ;;  %4727 = vmatpush3.bf16.msra.mxu0 %v4724_v54 }
 0x769   :  { %v1896_v31 = vsel %vm1894_vm6, %v1893_v34, %v1886_v30 }
 0x76a   :  { %4545 = vmatmul.mubr.msk.f32.vlgmr.msra.gmra.mrb[16].mxu1 %vm448_vm2, %v1896_v31  ;;  %v4271_v31 = vld [vmem:[%s6138_s20] ss:$0 sm:$0xff] }
 0x76b   :  { %4731 = vmatpush3.bf16.msra.mxu1 %v4728_v58 }
 0x76c   :  { %4733 = vmatprep.subr.bf16.mxu1 %v4732_v16 }
 0x76f   :  { %4735 = vmatpush3.bf16.msra.mxu1 %v4732_v16 }
 0x770   :  { %4580 = vmatprep.subr.mxu1 %v5333_v22 }
 0x83d   :  { %v4546_v36 = vpop.f32.mrb[16].mxu1 }
 0x83e   :  { %v1986_v37 = vadd.f32 %v4546_v36, %v4263_v35  ;;  %v1980_v24 = vpop.f32.mrb[17].mxu1 }
 0x83f   :  { %v1981_v38 = vadd.f32 %v4263_v35, %v1980_v24 }
 0x840   :  { %v1990_v39 = vadd.f32 %v1986_v37, %v5636_v19 }
 0x841   :  { %v1989_v27 = vadd.f32 %v1981_v38, %v5634_v18 }
 0x842   :  { %v1996_v25 = vsel %vm448_vm2, %v1990_v39, 0.0 }
 0x843   :  { %1997 = vadd.xlane.f32.xlu1 %v1996_v25  ;;  %v1993_v29 = vsel %vm448_vm2, %v1989_v27, 0.0 }
 0x844   :  { %1994 = vadd.xlane.f32.xlu0 %v1993_v29 }
 0x8d0   :  { %v1998_v26 = vpop.xlane.xlu1 %1997 }
 0x8d1   :  { %v2001_v28 = vmul.f32 0.03125, %v1998_v26  ;;  %v1995_v40 = vpop.xlane.xlu0 %1994 }
 0x8d2   :  { %v2000_v42 = vmul.f32 0.03125, %v1995_v40 }
 0x8d3   :  { %v2003_v43 = vsub.f32 %v1990_v39, %v2001_v28 }
 0x8d4   :  { %v2002_v44 = vsub.f32 %v1989_v27, %v2000_v42 }
 0x8d5   :  { %v2005_v18 = vmul.f32 %v2003_v43, %v2003_v43 }
 0x8d6   :  { %v2004_v45 = vmul.f32 %v2002_v44, %v2002_v44 }
 0x8d7   :  { %v2009_v47 = vsel %vm448_vm2, %v2005_v18, 0.0 }
 0x8d8   :  { %v2006_v19 = vsel %vm448_vm2, %v2004_v45, 0.0 }
 0x8d9   :  { %2007 = vadd.xlane.f32.xlu0 %v2006_v19 }
 0x8dd   :  { %2010 = vadd.xlane.f32.xlu0 %v2009_v47  ;;  %v2268_v47 = vld [vmem:[#allocation18] sm:$0xff] }
 0x8de   :  { %v4736_v49 = vpack.c.bf16 %v2269_v48, %v2268_v47 }
 0x8e0   :  { %4737 = vmatprep.subr.bf16.mxu0 %v4736_v49 }
 0x966   :  { %v2008_v61 = vpop.xlane.xlu0 %2007 }
 0x967   :  { %v2012_v56 = vmul.f32 0.03125, %v2008_v61 }
 0x969   :  { %v2014_v62 = vadd.f32 1e-05, %v2012_v56 }
 0x96a   :  { %v2011_v63 = vpop.xlane.xlu0 %2010 }
 0x96b   :  { %4866 = vrsqrt.f32 %v2014_v62  ;;  %v2013_v0 = vmul.f32 0.03125, %v2011_v63  ;;  %v4274_v63 = vld [vmem:[#allocation15] ss:$0 sm:$0xff] }
 0x96d   :  { %v2015_v1 = vadd.f32 1e-05, %v2013_v0 }
 0x96f   :  { %4868 = vrsqrt.f32 %v2015_v1 }
 0x975   :  { %v4867_v2 = vpop.eup %4866 }
 0x976   :  { %v2018_v4 = vmul.f32 %v4867_v2, %v2002_v44 }
 0x978   :  { %v2026_v8 = vmul.f32 %v4266_v3, %v2018_v4 }
 0x979   :  { %v4869_v9 = vpop.eup %4868 }
 0x97a   :  { %v2019_v10 = vmul.f32 %v4869_v9, %v2003_v43  ;;  %v2034_v11 = vadd.f32 %v4267_v5, %v2026_v8 }
 0x97c   :  { %v2027_v12 = vmul.f32 %v4266_v3, %v2019_v10  ;;  %4555 = vmatprep.mubr.msk.f32.mxu0 %vm448_vm2, %v2034_v11  ;;  %v4275_v3 = vld [vmem:[#allocation16] ss:$0 sm:$0xff]  ;;  %v4276_v10 = vld [vmem:[#allocation19] ss:$0 sm:$0xff] }
 0x97e   :  { %v2035_v13 = vadd.f32 %v4267_v5, %v2027_v12 }
 0x980   :  { %4556 = vmatmul.mubr.msk.f32.vlgmr.msra.gmra.mrb[20].mxu0 %vm448_vm2, %v2035_v13 }
 0x981   :  { %4739 = vmatpush3.bf16.msra.mxu0 %v4736_v49 }
 0x982   :  { %4741 = vmatprep.subr.bf16.mxu0 %v4740_v52 }
 0x985   :  { %4743 = vmatpush3.bf16.msra.mxu0 %v4740_v52 }
 0x986   :  { %4585 = vmatprep.subr.mxu0 %v5333_v22 }
 0xa53   :  { %v4557_v21 = vpop.f32.mrb[20].mxu0 }
 0xa54   :  { %v2125_v23 = vadd.f32 %v4557_v21, %v4268_v20  ;;  %v2119_v32 = vpop.f32.mrb[21].mxu0 }
 0xa55   :  { %v2120_v33 = vadd.f32 %v4268_v20, %v2119_v32 }
 0xa56   :  { %v2129_v30 = vmax.f32 %v2125_v23, 0.0 }
 0xa57   :  { %v2128_v34 = vmax.f32 %v2120_v33, 0.0 }
 0xa59   :  { %4566 = vmatprep.mubr.msk.f32.mxu1 %vm448_vm2, %v2128_v34 }
 0xa5a   :  { %4567 = vmatmul.mubr.msk.f32.vlgmr.msra.gmra.mrb[18].mxu1 %vm448_vm2, %v2129_v30 }
 0xa5b   :  { %4582 = vmatprep.mubr.msk.f32.mxu1 %vm5336_vm3, %v5333_v22 }
 0xb2d   :  { %v4568_v35 = vpop.f32.mrb[18].mxu1 }
 0xb2e   :  { %v2219_v36 = vadd.f32 %v4568_v35, %v4271_v31  ;;  %v2213_v37 = vpop.f32.mrb[19].mxu1 }
 0xb2f   :  { %v2214_v24 = vadd.f32 %v4271_v31, %v2213_v37 }
 0xb30   :  { %v2223_v38 = vadd.f32 %v2219_v36, %v2035_v13 }
 0xb31   :  { %v2222_v39 = vadd.f32 %v2214_v24, %v2034_v11 }
 0xb32   :  { %v2229_v27 = vsel %vm448_vm2, %v2223_v38, 0.0 }
 0xb33   :  { %2230 = vadd.xlane.f32.xlu0 %v2229_v27  ;;  %v2226_v25 = vsel %vm448_vm2, %v2222_v39, 0.0 }
 0xb34   :  { %2227 = vadd.xlane.f32.xlu1 %v2226_v25 }
 0xbc0   :  { %v2231_v29 = vpop.xlane.xlu0 %2230 }
 0xbc1   :  { %v2233_v26 = vmul.f32 0.03125, %v2231_v29  ;;  %v2228_v28 = vpop.xlane.xlu1 %2227 }
 0xbc2   :  { %v2232_v40 = vmul.f32 0.03125, %v2228_v28 }
 0xbc3   :  { %v2235_v42 = vsub.f32 %v2223_v38, %v2233_v26 }
 0xbc4   :  { %v2234_v43 = vsub.f32 %v2222_v39, %v2232_v40 }
 0xbc5   :  { %v2237_v44 = vmul.f32 %v2235_v42, %v2235_v42 }
 0xbc6   :  { %v2236_v45 = vmul.f32 %v2234_v43, %v2234_v43 }
 0xbc7   :  { %v2241_v19 = vsel %vm448_vm2, %v2237_v44, 0.0 }
 0xbc8   :  { %2242 = vadd.xlane.f32.xlu0 %v2241_v19  ;;  %v2238_v18 = vsel %vm448_vm2, %v2236_v45, 0.0 }
 0xbc9   :  { %2239 = vadd.xlane.f32.xlu1 %v2238_v18 }
 0xc55   :  { %v2243_v54 = vpop.xlane.xlu0 %2242 }
 0xc56   :  { %v2245_v55 = vmul.f32 0.03125, %v2243_v54  ;;  %v2240_v57 = vpop.xlane.xlu1 %2239 }
 0xc57   :  { %v2244_v58 = vmul.f32 0.03125, %v2240_v57 }
 0xc58   :  { %v2247_v61 = vadd.f32 1e-05, %v2245_v55 }
 0xc59   :  { %v2246_v56 = vadd.f32 1e-05, %v2244_v58 }
 0xc5a   :  { %4870 = vrsqrt.f32 %v2247_v61 }
 0xc5b   :  { %4872 = vrsqrt.f32 %v2246_v56 }
 0xc64   :  { %v4871_v62 = vpop.eup %4870 }
 0xc65   :  { %v4873_v0 = vpop.eup %4872  ;;  %v2251_v1 = vmul.f32 %v4871_v62, %v2235_v42 }
 0xc66   :  { %v2250_v2 = vmul.f32 %v4873_v0, %v2234_v43 }
 0xc67   :  { %v2259_v4 = vmul.f32 %v4274_v63, %v2251_v1 }
 0xc68   :  { %v2258_v5 = vmul.f32 %v4274_v63, %v2250_v2 }
 0xc69   :  { %v5882_v9 = vadd.f32 %v4275_v3, %v2259_v4 }
 0xc6a   :  { %v5880_v8 = vadd.f32 %v4275_v3, %v2258_v5 }
 0xc6c   :  { %4577 = vmatprep.mubr.msk.f32.mxu0 %vm448_vm2, %v5880_v8 }
 0xc6d   :  { %4578 = vmatmul.mubr.msk.f32.vlgmr.msra.gmra.mrb[22].mxu0 %vm448_vm2, %v5882_v9 }
 0xc6e   :  { %4587 = vmatprep.mubr.msk.f32.mxu0 %vm5336_vm3, %v5333_v22 }
 0xd40   :  { %v4579_v11 = vpop.f32.mrb[22].mxu0 }
 0xd41   :  { %v5890_v12 = vadd.f32 %v4579_v11, %v4276_v10  ;;  %v2351_v13 = vpop.f32.mrb[23].mxu0 }
 0xd42   :  { %v5892_v14 = vadd.f32 %v4276_v10, %v2351_v13 }
 0xd43   :  { %2364 = vrot.lane.b32.xlu0 %v5890_v12, %s5335_s8 }
 0xd44   :  { %2362 = vrot.lane.b32.xlu1 %v5892_v14, %s5335_s8 }
 0xd47   :  { %2370 = vrot.lane.b32.xlu0 %v5892_v14, %s5337_s28 }
 0xd48   :  { %2366 = vrot.lane.b32.xlu1 %v5892_v14, %s5334_s29 }
 0xd4b   :  { %2374 = vrot.lane.b32.xlu0 %v5892_v14, %s5338_s14 }
 0xd4c   :  { %2368 = vrot.lane.b32.xlu1 %v5890_v12, %s5334_s29 }
 0xd50   :  { %2372 = vrot.lane.b32.xlu1 %v5890_v12, %s5337_s28 }
 0xd54   :  { %2450 = vrot.lane.b32.xlu1 %v5890_v12, %s5338_s14 }
 0xdb5   :  { %v5910_v15 = vpop.permute.xlu0 %2364 }
 0xdb6   :  { %2602 = vrot.lane.b32.xlu1 %v5910_v15, %s5338_s14  ;;  %v5914_v16 = vpop.permute.xlu1 %2362 }
 0xdb7   :  { %2526 = vrot.lane.b32.xlu0 %v5914_v16, %s5338_s14 }
 0xdb9   :  { %v5918_v20 = vpop.permute.xlu0 %2370 }
 0xdba   :  { %v5920_v21 = vpop.permute.xlu1 %2366 }
 0xdbb   :  { %2678 = vrot.lane.b32.xlu0 %v5920_v21, %s5338_s14 }
 0xdbd   :  { %v2375_v23 = vpop.permute.xlu0 %2374 }
 0xdbe   :  { %4581 = vmatpush3.xpose.msk.msra.mxu1 %vm546_vm4, %v2375_v23  ;;  %v5925_v32 = vpop.permute.xlu1 %2368 }
 0xdbf   :  { %2830 = vrot.lane.b32.xlu0 %v5918_v20, %s5338_s14  ;;  %2754 = vrot.lane.b32.xlu1 %v5925_v32, %s5338_s14 }
 0xdc0   :  { %4590 = vmatprep.subr.mxu1 %v5333_v22 }
 0xdc1   :  { %4583 = vmatmul.mubr.msk.f32.vlgmr.msra.gmra.mrb[20].mxu1 %vm546_vm4, %v5892_v14 }
 0xdc2   :  { %v5934_v33 = vpop.permute.xlu1 %2372  ;;  %4592 = vmatprep.mubr.msk.f32.mxu1 %vm5336_vm3, %v5333_v22 }
 0xdc3   :  { %2906 = vrot.lane.b32.xlu1 %v5934_v33, %s5338_s14 }
 0xdc6   :  { %v2451_v34 = vpop.permute.xlu1 %2450 }
 0xdc7   :  { %4586 = vmatpush3.xpose.msk.msra.mxu0 %vm546_vm4, %v2451_v34 }
 0xdc8   :  { %4595 = vmatprep.subr.mxu0 %v5333_v22 }
 0xdca   :  { %4588 = vmatmul.mubr.msk.f32.vlgmr.msra.gmra.mrb[24].mxu0 %vm546_vm4, %v5890_v12 }
 0xdcb   :  { %4597 = vmatprep.mubr.msk.f32.mxu0 %vm5336_vm3, %v5333_v22 }
 0xe28   :  { %v2603_v30 = vpop.permute.xlu1 %2602 }
 0xe29   :  { %v2527_v31 = vpop.permute.xlu0 %2526  ;;  %4596 = vmatpush3.xpose.msk.msra.mxu0 %vm546_vm4, %v2603_v30 }
 0xe2a   :  { %4591 = vmatpush3.xpose.msk.msra.mxu1 %vm546_vm4, %v2527_v31  ;;  %4605 = vmatprep.subr.mxu0 %v5333_v22 }
 0xe2b   :  { %4600 = vmatprep.subr.mxu1 %v5333_v22 }
 0xe2c   :  { %4598 = vmatmul.mubr.msk.f32.vlgmr.msra.gmra.mrb[26].mxu0 %vm546_vm4, %v5910_v15 }
 0xe2d   :  { %4593 = vmatmul.mubr.msk.f32.vlgmr.msra.gmra.mrb[22].mxu1 %vm546_vm4, %v5914_v16  ;;  %v2679_v35 = vpop.permute.xlu0 %2678  ;;  %4607 = vmatprep.mubr.msk.f32.mxu0 %vm5336_vm3, %v5333_v22 }
 0xe2e   :  { %4601 = vmatpush3.xpose.msk.msra.mxu1 %vm546_vm4, %v2679_v35  ;;  %4602 = vmatprep.mubr.msk.f32.mxu1 %vm5336_vm3, %v5333_v22 }
 0xe2f   :  { %4610 = vmatprep.subr.mxu1 %v5333_v22 }
 0xe31   :  { %4603 = vmatmul.mubr.msk.f32.vlgmr.msra.gmra.mrb[24].mxu1 %vm546_vm4, %v5920_v21  ;;  %v2831_v36 = vpop.permute.xlu0 %2830  ;;  %v2755_v37 = vpop.permute.xlu1 %2754 }
 0xe32   :  { %4606 = vmatpush3.xpose.msk.msra.mxu0 %vm546_vm4, %v2755_v37  ;;  %4611 = vmatpush3.xpose.msk.msra.mxu1 %vm546_vm4, %v2831_v36 }
 0xe33   :  { %4612 = vmatprep.mubr.msk.f32.mxu1 %vm5336_vm3, %v5333_v22  ;;  %4615 = vmatprep.subr.mxu0 %v5333_v22 }
 0xe34   :  { %4620 = vmatprep.subr.mxu1 %v5333_v22 }
 0xe35   :  { %4608 = vmatmul.mubr.msk.f32.vlgmr.msra.gmra.mrb[28].mxu0 %vm546_vm4, %v5925_v32  ;;  %4613 = vmatmul.mubr.msk.f32.vlgmr.msra.gmra.mrb[26].mxu1 %vm546_vm4, %v5918_v20  ;;  %v2907_v24 = vpop.permute.xlu1 %2906 }
 0xe36   :  { %4616 = vmatpush3.xpose.msk.msra.mxu0 %vm546_vm4, %v2907_v24  ;;  %4617 = vmatprep.mubr.msk.f32.mxu0 %vm5336_vm3, %v5333_v22 }
 0xe37   :  { %4625 = vmatprep.subr.mxu0 %v5333_v22  ;;  %4622 = vmatprep.mubr.msk.f32.mxu1 %vm5336_vm3, %v5333_v22 }
 0xe39   :  { %4618 = vmatmul.mubr.msk.f32.vlgmr.msra.gmra.mrb[30].mxu0 %vm546_vm4, %v5934_v33 }
 0xe3a   :  { %4627 = vmatprep.mubr.msk.f32.mxu0 %vm5336_vm3, %v5333_v22 }
 0xe94   :  { %v2446_v38 = vpop.f32.mrb[20].mxu1 }
 0xe95   :  { %v2982_v39 = vmul.f32 0.35355338, %v2446_v38  ;;  %v4584_v27 = vpop.f32.mrb[21].mxu1 }
 0xe97   :  { %v2990_v25 = vadd.f32 %v2982_v39, %v5740_v41 }
 0xe99   :  { %v2998_v29 = vsel %vm546_vm4, %v2990_v25, -inf }
 0xe9a   :  { %2999 = vmax.xlane.f32.xlu0 %v2998_v29 }
 0xe9d   :  { %v2522_v26 = vpop.f32.mrb[24].mxu0 }
 0xe9e   :  { %v2983_v28 = vmul.f32 0.35355338, %v2522_v26  ;;  %v4589_v40 = vpop.f32.mrb[25].mxu0 }
 0xea0   :  { %v2991_v42 = vadd.f32 %v2983_v28, %v5745_v46 }
 0xea2   :  { %v3001_v43 = vsel %vm546_vm4, %v2991_v42, -inf }
 0xea3   :  { %3002 = vmax.xlane.f32.xlu1 %v3001_v43 }
 0xeff   :  { %v2674_v44 = vpop.f32.mrb[26].mxu0 }
 0xf00   :  { %v2985_v45 = vmul.f32 0.35355338, %v2674_v44  ;;  %v2598_v19 = vpop.f32.mrb[22].mxu1  ;;  %v4599_v18 = vpop.f32.mrb[27].mxu0 }
 0xf01   :  { %v2984_v47 = vmul.f32 0.35355338, %v2598_v19  ;;  %v4594_v48 = vpop.f32.mrb[23].mxu1 }
 0xf02   :  { %v2993_v50 = vadd.f32 %v2985_v45, %v5756_v60 }
 0xf03   :  { %v2992_v49 = vadd.f32 %v2984_v47, %v5751_v53 }
 0xf04   :  { %v2750_v41 = vpop.f32.mrb[24].mxu1  ;;  %v3007_v58 = vsel %vm546_vm4, %v2993_v50, -inf }
 0xf05   :  { %v2986_v51 = vmul.f32 0.35355338, %v2750_v41  ;;  %v4604_v52 = vpop.f32.mrb[25].mxu1  ;;  %v3004_v54 = vsel %vm546_vm4, %v2992_v49, -inf }
 0xf06   :  { %3005 = vmax.xlane.f32.xlu0 %v3004_v54 }
 0xf07   :  { %v2994_v46 = vadd.f32 %v2986_v51, %v5754_v59 }
 0xf08   :  { %v2826_v55 = vpop.f32.mrb[28].mxu0  ;;  %v2902_v57 = vpop.f32.mrb[26].mxu1 }
 0xf09   :  { %v2987_v61 = vmul.f32 0.35355338, %v2826_v55  ;;  %v2988_v56 = vmul.f32 0.35355338, %v2902_v57  ;;  %v4609_v62 = vpop.f32.mrb[29].mxu0  ;;  %v4614_v63 = vpop.f32.mrb[27].mxu1 }
 0xf0a   :  { %v3010_v53 = vsel %vm546_vm4, %v2994_v46, -inf  ;;  %3008 = vmax.xlane.f32.xlu0 %v3007_v58 }
 0xf0b   :  { %3011 = vmax.xlane.f32.xlu1 %v3010_v53  ;;  %v2996_v60 = vadd.f32 %v2988_v56, %v5761_v6  ;;  %v2995_v0 = vadd.f32 %v2987_v61, %v5763_v7 }
 0xf0c   :  { %v2978_v1 = vpop.f32.mrb[30].mxu0 }
 0xf0d   :  { %v2989_v2 = vmul.f32 0.35355338, %v2978_v1  ;;  %v4619_v3 = vpop.f32.mrb[31].mxu0  ;;  %v3016_v59 = vsel %vm546_vm4, %v2996_v60, -inf  ;;  %v3013_v4 = vsel %vm546_vm4, %v2995_v0, -inf }
 0xf0e   :  { %3014 = vmax.xlane.f32.xlu0 %v3013_v4 }
 0xf0f   :  { %3017 = vmax.xlane.f32.xlu1 %v3016_v59  ;;  %v2997_v5 = vadd.f32 %v2989_v2, %v5769_v17 }
 0xf11   :  { %v3019_v10 = vsel %vm546_vm4, %v2997_v5, -inf }
 0xf12   :  { %3020 = vmax.xlane.f32.xlu0 %v3019_v10 }
 0xf20   :  { %3086 = vrot.lane.b32.xlu1 %v5892_v14, %s5339_s12 }
 0xf24   :  { %3238 = vrot.lane.b32.xlu1 %v5914_v16, %s5339_s12 }
 0xf27   :  { %v3000_v17 = vpop.xlane.xlu0 %2999 }
 0xf28   :  { %3314 = vrot.lane.b32.xlu1 %v5910_v15, %s5339_s12  ;;  %3162 = vrot.lane.b32.xlu0 %v5890_v12, %s5339_s12  ;;  %v3022_v13 = vsub.f32 %v2990_v25, %v3000_v17 }
 0xf2a   :  { %v3030_v14 = vmul.f32 1.442695, %v3022_v13 }
 0xf2c   :  { %3466 = vrot.lane.b32.xlu1 %v5925_v32, %s5339_s12  ;;  %3390 = vrot.lane.b32.xlu0 %v5920_v21, %s5339_s12 }
 0xf30   :  { %v3003_v6 = vpop.xlane.xlu1 %3002 }
 0xf31   :  { %v3023_v7 = vsub.f32 %v2991_v42, %v3003_v6 }
 0xf33   :  { %v3032_v11 = vmul.f32 1.442695, %v3023_v7 }
 0xf35   :  { %4874 = vpow2.f32 %v3032_v11 }
 0xf36   :  { %4876 = vpow2.f32 %v3030_v14 }
 0xf3f   :  { %v6010_v16 = vpop.eup %4874 }
 0xf40   :  { %v3049_v15 = vsel %vm546_vm4, %v6010_v16, 0.0  ;;  %v6014_v12 = vpop.eup %4876 }
 0xf41   :  { %v3046_v23 = vsel %vm546_vm4, %v6014_v12, 0.0 }
 0xf4b   :  { %3050 = vadd.xlane.f32.xlu0 %v3049_v15 }
 0xf50   :  { %3047 = vadd.xlane.f32.xlu1 %v3046_v23 }
 0xf93   :  { %v3006_v21 = vpop.xlane.xlu0 %3005 }
 0xf94   :  { %v3024_v32 = vsub.f32 %v2992_v49, %v3006_v21 }
 0xf96   :  { %v3034_v34 = vmul.f32 1.442695, %v3024_v32 }
 0xf97   :  { %v3009_v30 = vpop.xlane.xlu0 %3008 }
 0xf98   :  { %4878 = vpow2.f32 %v3034_v34  ;;  %v3025_v31 = vsub.f32 %v2993_v50, %v3009_v30  ;;  %v3012_v35 = vpop.xlane.xlu1 %3011 }
 0xf99   :  { %v3026_v36 = vsub.f32 %v2994_v46, %v3012_v35  ;;  %v3724_v35 = vld [vmem:[#allocation21] sm:$0xff] }
 0xf9a   :  { %v3036_v37 = vmul.f32 1.442695, %v3025_v31 }
 0xf9b   :  { %v3038_v24 = vmul.f32 1.442695, %v3026_v36  ;;  %v3015_v38 = vpop.xlane.xlu0 %3014  ;;  %v3725_v36 = vld [vmem:[#allocation21 + $0x8] sm:$0xff] }
 0xf9c   :  { %4880 = vpow2.f32 %v3036_v37  ;;  %v3027_v39 = vsub.f32 %v2995_v0, %v3015_v38  ;;  %v3018_v27 = vpop.xlane.xlu1 %3017  ;;  %v4744_v37 = vpack.c.bf16 %v3725_v36, %v3724_v35  ;;  %v3727_v38 = vld [vmem:[#allocation21 + $0x18] sm:$0xff]  ;;  %v4306_v36 = vld [vmem:[#allocation24] ss:$0 sm:$0xff] }
 0xf9d   :  { %4882 = vpow2.f32 %v3038_v24  ;;  %v3028_v25 = vsub.f32 %v2996_v60, %v3018_v27  ;;  %v3726_v24 = vld [vmem:[#allocation21 + $0x10] sm:$0xff] }
 0xf9e   :  { %v3040_v29 = vmul.f32 1.442695, %v3027_v39  ;;  %v4748_v39 = vpack.c.bf16 %v3727_v38, %v3726_v24  ;;  %v4307_v24 = vld [vmem:[%s6140_s15] ss:$0 sm:$0xff] }
 0xf9f   :  { %v3042_v26 = vmul.f32 1.442695, %v3028_v25  ;;  %v3021_v28 = vpop.xlane.xlu0 %3020 }
 0xfa0   :  { %4884 = vpow2.f32 %v3040_v29  ;;  %v3029_v40 = vsub.f32 %v2997_v5, %v3021_v28  ;;  %v3087_v42 = vpop.permute.xlu1 %3086 }
 0xfa1   :  { %4886 = vpow2.f32 %v3042_v26  ;;  %4621 = vmatpush3.msra.mxu1 %v3087_v42 }
 0xfa2   :  { %v4879_v43 = vpop.eup %4878  ;;  %v3044_v44 = vmul.f32 1.442695, %v3029_v40  ;;  %4630 = vmatprep.subr.mxu1 %v5333_v22 }
 0xfa3   :  { %v3163_v45 = vpop.permute.xlu0 %3162  ;;  %v3052_v19 = vsel %vm546_vm4, %v4879_v43, 0.0 }
 0xfa4   :  { %4888 = vpow2.f32 %v3044_v44  ;;  %3053 = vadd.xlane.f32.xlu1 %v3052_v19  ;;  %4626 = vmatpush3.msra.mxu0 %v3163_v45  ;;  %v3239_v55 = vpop.permute.xlu1 %3238 }
 0xfa5   :  { %4635 = vmatprep.subr.mxu0 %v5333_v22 }
 0xfa6   :  { %v4881_v18 = vpop.eup %4880 }
 0xfa7   :  { %v4883_v47 = vpop.eup %4882  ;;  %v3055_v48 = vsel %vm546_vm4, %v4881_v18, 0.0  ;;  %v3391_v58 = vpop.permute.xlu0 %3390 }
 0xfa8   :  { %3056 = vadd.xlane.f32.xlu0 %v3055_v48  ;;  %v3058_v49 = vsel %vm546_vm4, %v4883_v47, 0.0  ;;  %v3315_v57 = vpop.permute.xlu1 %3314 }
 0xfa9   :  { %3059 = vadd.xlane.f32.xlu1 %v3058_v49 }
 0xfaa   :  { %v4885_v41 = vpop.eup %4884 }
 0xfab   :  { %v4887_v50 = vpop.eup %4886  ;;  %v3061_v51 = vsel %vm546_vm4, %v4885_v41, 0.0 }
 0xfac   :  { %3062 = vadd.xlane.f32.xlu0 %v3061_v51  ;;  %v3064_v52 = vsel %vm546_vm4, %v4887_v50, 0.0  ;;  %v3467_v56 = vpop.permute.xlu1 %3466 }
 0xfad   :  { %3065 = vadd.xlane.f32.xlu1 %v3064_v52 }
 0xfae   :  { %v6025_v54 = vpop.eup %4888 }
 0xfaf   :  { %v3067_v46 = vsel %vm546_vm4, %v6025_v54, 0.0 }
 0xfb0   :  { %3068 = vadd.xlane.f32.xlu0 %v3067_v46 }
 0xfbe   :  { %3618 = vrot.lane.b32.xlu1 %v5934_v33, %s5339_s12 }
 0xfc6   :  { %3542 = vrot.lane.b32.xlu0 %v5918_v20, %s5339_s12 }
 0xfd8   :  { %v3051_v61 = vpop.xlane.xlu0 %3050 }
 0xfd9   :  { %4890 = vrcp.f32 %v3051_v61 }
 0xfdd   :  { %v3048_v62 = vpop.xlane.xlu1 %3047 }
 0xfde   :  { %4892 = vrcp.f32 %v3048_v62 }
 0xfe3   :  { %v4891_v63 = vpop.eup %4890 }
 0xfe4   :  { %v3073_v53 = vmul.f32 %v4891_v63, %v6010_v16 }
 0xfe6   :  { %4628 = vmatmul.mubr.msk.f32.vlgmr.msra.gmra.mrb[32].mxu0 %vm546_vm4, %v3073_v53 }
 0xfe7   :  { %4636 = vmatpush3.msra.mxu0 %v3315_v57  ;;  %4637 = vmatprep.mubr.msk.f32.mxu0 %vm5336_vm3, %v5333_v22 }
 0xfe8   :  { %v4893_v33 = vpop.eup %4892  ;;  %4645 = vmatprep.subr.mxu0 %v5333_v22 }
 0xfe9   :  { %v3071_v20 = vmul.f32 %v4893_v33, %v6014_v12 }
 0xfeb   :  { %4623 = vmatmul.mubr.msk.f32.vlgmr.msra.gmra.mrb[28].mxu1 %vm546_vm4, %v3071_v20 }
 0xfec   :  { %4631 = vmatpush3.msra.mxu1 %v3239_v55  ;;  %4632 = vmatprep.mubr.msk.f32.mxu1 %vm5336_vm3, %v5333_v22 }
 0xfed   :  { %4640 = vmatprep.subr.mxu1 %v5333_v22 }
0x1031   :  { %v3054_v60 = vpop.xlane.xlu1 %3053 }
0x1032   :  { %4894 = vrcp.f32 %v3054_v60 }
0x1035   :  { %v3057_v0 = vpop.xlane.xlu0 %3056 }
0x1036   :  { %4896 = vrcp.f32 %v3057_v0  ;;  %v3060_v1 = vpop.xlane.xlu1 %3059 }
0x1037   :  { %4898 = vrcp.f32 %v3060_v1 }
0x1039   :  { %v3063_v2 = vpop.xlane.xlu0 %3062 }
0x103a   :  { %4900 = vrcp.f32 %v3063_v2  ;;  %v3066_v3 = vpop.xlane.xlu1 %3065 }
0x103b   :  { %4902 = vrcp.f32 %v3066_v3 }
0x103c   :  { %v4895_v59 = vpop.eup %4894 }
0x103d   :  { %v3075_v4 = vmul.f32 %v4895_v59, %v4879_v43  ;;  %v3069_v5 = vpop.xlane.xlu0 %3068 }
0x103e   :  { %4904 = vrcp.f32 %v3069_v5  ;;  %v3619_v12 = vpop.permute.xlu1 %3618 }
0x103f   :  { %4633 = vmatmul.mubr.msk.f32.vlgmr.msra.gmra.mrb[30].mxu1 %vm546_vm4, %v3075_v4 }
0x1040   :  { %v4897_v10 = vpop.eup %4896  ;;  %4641 = vmatpush3.msra.mxu1 %v3391_v58  ;;  %4642 = vmatprep.mubr.msk.f32.mxu1 %vm5336_vm3, %v5333_v22  ;;  %v4303_v58 = vld [vmem:[#allocation22] ss:$0 sm:$0xff] }
0x1041   :  { %v4899_v6 = vpop.eup %4898  ;;  %v3077_v7 = vmul.f32 %v4897_v10, %v4881_v18  ;;  %4650 = vmatprep.subr.mxu1 %v5333_v22  ;;  %v3543_v11 = vpop.permute.xlu0 %3542 }
0x1042   :  { %v3079_v17 = vmul.f32 %v4899_v6, %v4883_v47 }
0x1043   :  { %4638 = vmatmul.mubr.msk.f32.vlgmr.msra.gmra.mrb[34].mxu0 %vm546_vm4, %v3077_v7 }
0x1044   :  { %v4901_v13 = vpop.eup %4900  ;;  %4643 = vmatmul.mubr.msk.f32.vlgmr.msra.gmra.mrb[32].mxu1 %vm546_vm4, %v3079_v17  ;;  %4646 = vmatpush3.msra.mxu0 %v3467_v56 }
0x1045   :  { %v4903_v14 = vpop.eup %4902  ;;  %v3081_v16 = vmul.f32 %v4901_v13, %v4885_v41  ;;  %4651 = vmatpush3.msra.mxu1 %v3543_v11  ;;  %4647 = vmatprep.mubr.msk.f32.mxu0 %vm5336_vm3, %v5333_v22 }
0x1046   :  { %v3083_v15 = vmul.f32 %v4903_v14, %v4887_v50  ;;  %4652 = vmatprep.mubr.msk.f32.mxu1 %vm5336_vm3, %v5333_v22  ;;  %4655 = vmatprep.subr.mxu0 %v5333_v22 }
0x1047   :  { %4648 = vmatmul.mubr.msk.f32.vlgmr.msra.gmra.mrb[36].mxu0 %vm546_vm4, %v3081_v16  ;;  %4745 = vmatprep.subr.bf16.mxu1 %v4744_v37  ;;  %v3956_v16 = vld [vmem:[#allocation25] sm:$0xff] }
0x1048   :  { %v4905_v23 = vpop.eup %4904  ;;  %4653 = vmatmul.mubr.msk.f32.vlgmr.msra.gmra.mrb[34].mxu1 %vm546_vm4, %v3083_v15  ;;  %4656 = vmatpush3.msra.mxu0 %v3619_v12  ;;  %v3957_v15 = vld [vmem:[#allocation25 + $0x8] sm:$0xff] }
0x1049   :  { %v3085_v21 = vmul.f32 %v4905_v23, %v6025_v54  ;;  %4657 = vmatprep.mubr.msk.f32.mxu0 %vm5336_vm3, %v5333_v22  ;;  %4747 = vmatpush3.bf16.msra.mxu1 %v4744_v37  ;;  %v4760_v12 = vpack.c.bf16 %v3957_v15, %v3956_v16  ;;  %v4315_v15 = vld [vmem:[%s5490_s5] ss:$0 sm:$0xff] }
0x104a   :  { %4749 = vmatprep.subr.bf16.mxu1 %v4748_v39 }
0x104b   :  { %4658 = vmatmul.mubr.msk.f32.vlgmr.msra.gmra.mrb[38].mxu0 %vm546_vm4, %v3085_v21 }
0x104d   :  { %4751 = vmatpush3.bf16.msra.mxu1 %v4748_v39 }
0x104e   :  { %4761 = vmatprep.subr.bf16.mxu1 %v4760_v12 }
0x10b9   :  { %v3234_v32 = vpop.f32.mrb[32].mxu0 }
0x10ba   :  { %v4629_v34 = vpop.f32.mrb[33].mxu0 }
0x10be   :  { %v3158_v30 = vpop.f32.mrb[28].mxu1 }
0x10bf   :  { %v4624_v31 = vpop.f32.mrb[29].mxu1 }
0x1112   :  { %v3310_v27 = vpop.f32.mrb[30].mxu1 }
0x1113   :  { %3696 = vrot.lane.b32.xlu0 %v3310_v27, %s5318_s7  ;;  %v4634_v22 = vpop.f32.mrb[31].mxu1 }
0x1116   :  { %v3386_v25 = vpop.f32.mrb[34].mxu0 }
0x1117   :  { %v3462_v29 = vpop.f32.mrb[32].mxu1  ;;  %3698 = vrot.lane.b32.xlu1 %v3386_v25, %s5318_s7  ;;  %v4639_v26 = vpop.f32.mrb[35].mxu0  ;;  %s6139_s7 = sld [smem:[#allocation45_spill]] }
0x1118   :  { %3704 = vrot.lane.b32.xlu0 %v3462_v29, %s5340_s1  ;;  %v4644_v28 = vpop.f32.mrb[33].mxu1  ;;  %v3958_v26 = vld [vmem:[#allocation25 + $0x10] sm:$0xff] }
0x1119   :  { %v3959_v28 = vld [vmem:[#allocation25 + $0x18] sm:$0xff] }
0x111a   :  { %v3538_v40 = vpop.f32.mrb[36].mxu0 }
0x111b   :  { %v3614_v42 = vpop.f32.mrb[34].mxu1  ;;  %3706 = vrot.lane.b32.xlu1 %v3538_v40, %s5340_s1  ;;  %v4649_v43 = vpop.f32.mrb[37].mxu0  ;;  %v4764_v40 = vpack.c.bf16 %v3959_v28, %v3958_v26 }
0x111c   :  { %3712 = vrot.lane.b32.xlu0 %v3614_v42, %s5341_s24  ;;  %v4654_v44 = vpop.f32.mrb[35].mxu1  ;;  %v4308_v42 = vld [vmem:[%s6141_s4] ss:$0 sm:$0xff] }
0x111d   :  { %v3862_v6 = vld [vmem:[%s6139_s7] sm:$0xff]  ;;  %v3863_v7 = vld [vmem:[%s6139_s7 + $0x8] sm:$0xff]  ;;  %v3864_v11 = vld [vmem:[%s6139_s7 + $0x10] sm:$0xff] }
0x111e   :  { %v3690_v45 = vpop.f32.mrb[38].mxu0  ;;  %v4752_v17 = vpack.c.bf16 %v3863_v7, %v3862_v6  ;;  %v3865_v13 = vld [vmem:[%s6139_s7 + $0x18] sm:$0xff] }
0x111f   :  { %3714 = vrot.lane.b32.xlu1 %v3690_v45, %s5341_s24  ;;  %v4659_v19 = vpop.f32.mrb[39].mxu0  ;;  %v4756_v14 = vpack.c.bf16 %v3865_v13, %v3864_v11  ;;  %v4314_v11 = vld [vmem:[%s6143_s16] ss:$0 sm:$0xff] }
0x1120   :  { %4753 = vmatprep.subr.bf16.mxu0 %v4752_v17 }
0x1121   :  { %4755 = vmatpush3.bf16.msra.mxu0 %v4752_v17 }
0x1122   :  { %4757 = vmatprep.subr.bf16.mxu0 %v4756_v14 }
0x1125   :  { %4759 = vmatpush3.bf16.msra.mxu0 %v4756_v14 }
0x1185   :  { %v3697_v18 = vpop.permute.xlu0 %3696 }
0x1186   :  { %v3718_v49 = vsel %vm546_vm4, %v3158_v30, %v3697_v18 }
0x1189   :  { %v3699_v47 = vpop.permute.xlu1 %3698 }
0x118a   :  { %v3705_v48 = vpop.permute.xlu0 %3704  ;;  %v3719_v54 = vsel %vm546_vm4, %v3234_v32, %v3699_v47 }
0x118b   :  { %v3720_v50 = vsel %vm1891_vm5, %v3718_v49, %v3705_v48  ;;  %v4311_v48 = vld [vmem:[%s6142_s13] ss:$0 sm:$0xff] }
0x118d   :  { %v3707_v41 = vpop.permute.xlu1 %3706 }
0x118e   :  { %v3713_v51 = vpop.permute.xlu0 %3712  ;;  %v3721_v46 = vsel %vm1891_vm5, %v3719_v54, %v3707_v41 }
0x118f   :  { %v3722_v52 = vsel %vm1894_vm6, %v3720_v50, %v3713_v51 }
0x1190   :  { %4668 = vmatprep.mubr.msk.f32.mxu1 %vm448_vm2, %v3722_v52 }
0x1191   :  { %v3715_v55 = vpop.permute.xlu1 %3714 }
0x1192   :  { %v3723_v57 = vsel %vm1894_vm6, %v3721_v46, %v3715_v55 }
0x1193   :  { %4669 = vmatmul.mubr.msk.f32.vlgmr.msra.gmra.mrb[36].mxu1 %vm448_vm2, %v3723_v57 }
0x1194   :  { %4763 = vmatpush3.bf16.msra.mxu1 %v4760_v12 }
0x1195   :  { %4765 = vmatprep.subr.bf16.mxu1 %v4764_v40 }
0x1198   :  { %4767 = vmatpush3.bf16.msra.mxu1 %v4764_v40 }
0x1266   :  { %v4670_v61 = vpop.f32.mrb[36].mxu1 }
0x1267   :  { %v3813_v56 = vadd.f32 %v4670_v61, %v4303_v58  ;;  %v3807_v62 = vpop.f32.mrb[37].mxu1 }
0x1268   :  { %v3808_v63 = vadd.f32 %v4303_v58, %v3807_v62 }
0x1269   :  { %v3817_v53 = vadd.f32 %v3813_v56, %v5882_v9 }
0x126a   :  { %v3816_v33 = vadd.f32 %v3808_v63, %v5880_v8 }
0x126b   :  { %v3823_v20 = vsel %vm448_vm2, %v3817_v53, 0.0 }
0x126c   :  { %3824 = vadd.xlane.f32.xlu1 %v3823_v20  ;;  %v3820_v60 = vsel %vm448_vm2, %v3816_v33, 0.0 }
0x126d   :  { %3821 = vadd.xlane.f32.xlu0 %v3820_v60 }
0x12f9   :  { %v3825_v0 = vpop.xlane.xlu1 %3824 }
0x12fa   :  { %v3827_v1 = vmul.f32 0.03125, %v3825_v0  ;;  %v3822_v2 = vpop.xlane.xlu0 %3821  ;;  %v4094_v0 = vld [vmem:[%s5495_s3] sm:$0xff] }
0x12fb   :  { %v3826_v3 = vmul.f32 0.03125, %v3822_v2 }
0x12fc   :  { %v3829_v59 = vsub.f32 %v3817_v53, %v3827_v1  ;;  %v4095_v1 = vld [vmem:[%s5495_s3 + $0x8] sm:$0xff] }
0x12fd   :  { %v3828_v4 = vsub.f32 %v3816_v33, %v3826_v3  ;;  %v4768_v2 = vpack.c.bf16 %v4095_v1, %v4094_v0  ;;  %v4096_v3 = vld [vmem:[%s5495_s3 + $0x10] sm:$0xff] }
0x12fe   :  { %v3831_v8 = vmul.f32 %v3829_v59, %v3829_v59 }
0x12ff   :  { %v3830_v5 = vmul.f32 %v3828_v4, %v3828_v4  ;;  %4769 = vmatprep.subr.bf16.mxu0 %v4768_v2 }
0x1300   :  { %v3835_v10 = vsel %vm448_vm2, %v3831_v8, 0.0 }
0x1301   :  { %v3832_v9 = vsel %vm448_vm2, %v3830_v5, 0.0 }
0x1302   :  { %3833 = vadd.xlane.f32.xlu0 %v3832_v9 }
0x1306   :  { %3836 = vadd.xlane.f32.xlu0 %v3835_v10 }
0x138f   :  { %v3834_v23 = vpop.xlane.xlu0 %3833 }
0x1390   :  { %v3838_v21 = vmul.f32 0.03125, %v3834_v23 }
0x1392   :  { %v3840_v32 = vadd.f32 1e-05, %v3838_v21 }
0x1393   :  { %v3837_v34 = vpop.xlane.xlu0 %3836 }
0x1394   :  { %4906 = vrsqrt.f32 %v3840_v32  ;;  %v3839_v30 = vmul.f32 0.03125, %v3837_v34  ;;  %v4316_v34 = vld [vmem:[%s5500_s21] ss:$0 sm:$0xff] }
0x1396   :  { %v3841_v31 = vadd.f32 1e-05, %v3839_v30 }
0x1398   :  { %4908 = vrsqrt.f32 %v3841_v31 }
0x139e   :  { %v4907_v35 = vpop.eup %4906 }
0x139f   :  { %v3844_v37 = vmul.f32 %v4907_v35, %v3828_v4 }
0x13a1   :  { %v3852_v38 = vmul.f32 %v4306_v36, %v3844_v37 }
0x13a2   :  { %v4909_v39 = vpop.eup %4908 }
0x13a3   :  { %v3845_v27 = vmul.f32 %v4909_v39, %v3829_v59  ;;  %v3860_v22 = vadd.f32 %v4307_v24, %v3852_v38  ;;  %v4097_v59 = vld [vmem:[%s5495_s3 + $0x18] sm:$0xff] }
0x13a4   :  { %v4772_v4 = vpack.c.bf16 %v4097_v59, %v4096_v3 }
0x13a5   :  { %v3853_v25 = vmul.f32 %v4306_v36, %v3845_v27  ;;  %4679 = vmatprep.mubr.msk.f32.mxu0 %vm448_vm2, %v3860_v22 }
0x13a7   :  { %v3861_v29 = vadd.f32 %v4307_v24, %v3853_v25 }
0x13a9   :  { %4680 = vmatmul.mubr.msk.f32.vlgmr.msra.gmra.mrb[40].mxu0 %vm448_vm2, %v3861_v29 }
0x13aa   :  { %4771 = vmatpush3.bf16.msra.mxu0 %v4768_v2 }
0x13ab   :  { %4773 = vmatprep.subr.bf16.mxu0 %v4772_v4 }
0x13ae   :  { %4775 = vmatpush3.bf16.msra.mxu0 %v4772_v4 }
0x147c   :  { %v4681_v43 = vpop.f32.mrb[40].mxu0 }
0x147d   :  { %v3951_v44 = vadd.f32 %v4681_v43, %v4308_v42  ;;  %v3945_v45 = vpop.f32.mrb[41].mxu0 }
0x147e   :  { %v3946_v19 = vadd.f32 %v4308_v42, %v3945_v45 }
0x147f   :  { %v3955_v47 = vmax.f32 %v3951_v44, 0.0 }
0x1480   :  { %v3954_v18 = vmax.f32 %v3946_v19, 0.0 }
0x1482   :  { %4690 = vmatprep.mubr.msk.f32.mxu1 %vm448_vm2, %v3954_v18 }
0x1483   :  { %4691 = vmatmul.mubr.msk.f32.vlgmr.msra.gmra.mrb[38].mxu1 %vm448_vm2, %v3955_v47 }
0x1556   :  { %v4692_v49 = vpop.f32.mrb[38].mxu1 }
0x1557   :  { %v4045_v41 = vadd.f32 %v4692_v49, %v4311_v48  ;;  %v4039_v50 = vpop.f32.mrb[39].mxu1 }
0x1558   :  { %v4040_v51 = vadd.f32 %v4311_v48, %v4039_v50 }
0x1559   :  { %v4049_v52 = vadd.f32 %v4045_v41, %v3861_v29 }
0x155a   :  { %v4048_v54 = vadd.f32 %v4040_v51, %v3860_v22 }
0x155b   :  { %v4055_v46 = vsel %vm448_vm2, %v4049_v52, 0.0 }
0x155c   :  { %4056 = vadd.xlane.f32.xlu0 %v4055_v46  ;;  %v4052_v55 = vsel %vm448_vm2, %v4048_v54, 0.0 }
0x155d   :  { %4053 = vadd.xlane.f32.xlu1 %v4052_v55 }
0x15e9   :  { %v4057_v57 = vpop.xlane.xlu0 %4056 }
0x15ea   :  { %v4059_v58 = vmul.f32 0.03125, %v4057_v57  ;;  %v4054_v61 = vpop.xlane.xlu1 %4053 }
0x15eb   :  { %v4058_v56 = vmul.f32 0.03125, %v4054_v61 }
0x15ec   :  { %v4061_v62 = vsub.f32 %v4049_v52, %v4059_v58 }
0x15ed   :  { %v4060_v63 = vsub.f32 %v4048_v54, %v4058_v56 }
0x15ee   :  { %v4063_v53 = vmul.f32 %v4061_v62, %v4061_v62 }
0x15ef   :  { %v4062_v33 = vmul.f32 %v4060_v63, %v4060_v63 }
0x15f0   :  { %v4067_v20 = vsel %vm448_vm2, %v4063_v53, 0.0 }
0x15f1   :  { %4068 = vadd.xlane.f32.xlu0 %v4067_v20  ;;  %v4064_v60 = vsel %vm448_vm2, %v4062_v33, 0.0 }
0x15f2   :  { %4065 = vadd.xlane.f32.xlu1 %v4064_v60 }
0x167e   :  { %v4069_v5 = vpop.xlane.xlu0 %4068 }
0x167f   :  { %v4071_v9 = vmul.f32 0.03125, %v4069_v5  ;;  %v4066_v8 = vpop.xlane.xlu1 %4065 }
0x1680   :  { %v4070_v10 = vmul.f32 0.03125, %v4066_v8 }
0x1681   :  { %v4073_v6 = vadd.f32 1e-05, %v4071_v9 }
0x1682   :  { %v4072_v7 = vadd.f32 1e-05, %v4070_v10 }
0x1683   :  { %4910 = vrsqrt.f32 %v4073_v6 }
0x1684   :  { %4912 = vrsqrt.f32 %v4072_v7 }
0x168d   :  { %v4911_v17 = vpop.eup %4910 }
0x168e   :  { %v4913_v13 = vpop.eup %4912  ;;  %v4077_v14 = vmul.f32 %v4911_v17, %v4061_v62 }
0x168f   :  { %v4076_v16 = vmul.f32 %v4913_v13, %v4060_v63 }
0x1690   :  { %v4085_v12 = vmul.f32 %v4314_v11, %v4077_v14 }
0x1691   :  { %v4084_v23 = vmul.f32 %v4314_v11, %v4076_v16 }
0x1692   :  { %v4093_v32 = vadd.f32 %v4315_v15, %v4085_v12 }
0x1693   :  { %v4092_v21 = vadd.f32 %v4315_v15, %v4084_v23 }
0x1695   :  { %4701 = vmatprep.mubr.msk.f32.mxu0 %vm448_vm2, %v4092_v21 }
0x1696   :  { %4702 = vmatmul.mubr.msk.f32.vlgmr.msra.gmra.mrb[42].mxu0 %vm448_vm2, %v4093_v32 }
0x1769   :  { %v4703_v30 = vpop.f32.mrb[42].mxu0 }
0x176a   :  { %v4183_v31 = vadd.f32 %v4703_v30, %v4316_v34  ;;  %v4177_v35 = vpop.f32.mrb[43].mxu0 }
0x176b   :  { %v4178_v36 = vadd.f32 %v4316_v34, %v4177_v35 }
0x176c   :  { %4187 = vst.msk [vmem:[%s5505_s25 + $0x8] sm:$0xff] %vm345_vm1, %v4183_v31 }
0x176d   :  { %4186 = vst.msk [vmem:[%s5505_s25] sm:$0xff] %vm345_vm1, %v4178_v36 }
0x176e   :  { %4192 = vsyncpa [#allocation3], 1 }
0x176f   :  { %4193 = vsyncpa [#allocation5], 1 }
0x1770   :  { %4194 = vsyncpa [#allocation8], 1 }
0x1771   :  { %4195 = vsyncpa [#allocation11], 1 }
0x1772   :  { %4196 = vsyncpa [#allocation14], 1 }
0x1773   :  { %4197 = vsyncpa [#allocation17], 1 }
0x1774   :  { %4198 = vsyncpa [#allocation20], 1 }
0x1775   :  { %4199 = vsyncpa [#allocation23], 1 }
0x1776   :  { %4200 = vsyncpa [#allocation26], 1 }

</bundles_post_ra>
